<compile_context>
chip_gen: v7x
topology: tpu7x:2x2x1
jax: 0.10.0
libtpu: 0.0.40
codegen_flags: <defaults>
</compile_context>

<pallas_src>
import jax
import jax.numpy as jnp
from jax.experimental import pallas as pl
from jax.experimental.pallas import tpu as pltpu

_BN_EPS = 1e-5
_NEG_INF = -1e30
_LANES = 128


def _elu(y):
    # ELU(alpha=1): y if y > 0 else exp(y) - 1  (clamp the exp arg for safety)
    return jnp.where(y > 0.0, y, jnp.exp(jnp.minimum(y, 0.0)) - 1.0)


def _align8(r):
    return ((r + 7) // 8) * 8


class _SlabPacker:
    """Packs many small 2-D f32 parameters into one lane-dense [P, 128] slab.

    Row offsets are aligned to 8 sublanes so the in-kernel static slices are
    tile-aligned. Offsets/shapes are Python ints (static under jit tracing)."""

    def __init__(self):
        self._blocks = []
        self._off = 0

    def add(self, arr):
        arr = jnp.asarray(arr, jnp.float32)
        assert arr.ndim == 2 and arr.shape[1] <= _LANES, arr.shape
        r, c = arr.shape
        r_pad = _align8(r)
        block = jnp.zeros((r_pad, _LANES), jnp.float32).at[:r, :c].set(arr)
        self._blocks.append(block)
        entry = (self._off, r, c)
        self._off += r_pad
        return entry

    def finalize(self):
        return jnp.concatenate(self._blocks, axis=0)


def _build_fused_kernel(*, num_nodes, heads, feat_dims, fc_dims, layout, out_pad):
    num_gat = len(feat_dims)
    n, h = num_nodes, heads

    def _slab(slab_ref, entry):
        off, r, c = entry
        return slab_ref[off:off + r, 0:c]

    def kernel(x_ref, mask_ref, slab_ref, *rest):
        w_refs = rest[:num_gat]
        o_ref = rest[num_gat]

        mask = mask_ref[...]                    # [N, N] additive mask (0 / -1e30)
        x = x_ref[...]                          # [N, in_dim]

        # ---- GAT layers: GATConv(heads=H, concat=False) + bias + BN(eval) + ELU ----
        for l in range(num_gat):
            lay = layout["gat"][l]
            w3 = w_refs[l][...]                 # [H, K, F]  per-head projection
            attd = _slab(slab_ref, lay["attd"])   # [H, F]
            atts = _slab(slab_ref, lay["atts"])   # [H, F]
            scale = _slab(slab_ref, lay["scale"])  # [1, F]  (BN scale / H folded)
            shift = _slab(slab_ref, lay["shift"])  # [1, F]  (bias + BN shift folded)

            k = x.shape[1]
            xb = jnp.broadcast_to(x[None, :, :], (h, n, k))           # [H, N, K]
            xph = jnp.einsum('hnk,hkf->hnf', xb, w3,
                             preferred_element_type=jnp.float32)      # [H, N, F]

            # Attention logits e[h, i, j] = <att_dst[h], x_i W_h> + <att_src[h], x_j W_h>
            adst = jnp.sum(xph * attd[:, None, :], axis=-1, keepdims=True)   # [H,N,1]
            asrc = jnp.einsum('hqf,hnf->hqn', atts[:, None, :], xph,
                              preferred_element_type=jnp.float32)            # [H,1,N]

            e = adst + asrc                                 # [H, N, N]
            e = jnp.where(e > 0.0, e, 0.2 * e)              # LeakyReLU(0.2)
            e = e + mask[None, :, :]                        # broadcast mask over heads
            e = e - jnp.max(e, axis=-1, keepdims=True)
            p = jnp.exp(e)                                  # masked entries -> exact 0
            alpha = p / jnp.sum(p, axis=-1, keepdims=True)  # rows finite via self-loops

            # Per-head aggregation + head mean (1/H folded into `scale`), BN, ELU.
            agg = jnp.einsum('hij,hjf->hif', alpha, xph,
                             preferred_element_type=jnp.float32)      # [H, N, F]
            out = jnp.sum(agg, axis=0)                                # [N, F]
            x = _elu(out * scale + shift)

        # ---- FC heads: Linear+BN (no ELU) then Linear->ELU->BN ----
        outs = []
        for kf, lay in enumerate(layout["fc"]):
            w = _slab(slab_ref, lay["w"])
            b = _slab(slab_ref, lay["b"])
            y = jnp.dot(x, w, preferred_element_type=jnp.float32) + b
            if kf == 0:
                x = y                                        # BN folded into w / b
            else:
                s = _slab(slab_ref, lay["s"])
                t = _slab(slab_ref, lay["t"])
                x = _elu(y) * s + t                          # Linear -> ELU -> BN(eval)
            outs.append(x)

        # Single lane-dense store of both outputs (padded to 128 lanes).
        total = sum(fc_dims)
        parts = list(outs)
        if out_pad > total:
            parts.append(jnp.zeros((n, out_pad - total), jnp.float32))
        o_ref[...] = jnp.concatenate(parts, axis=1)

    return kernel


def _fold_and_pack(params, adj):
    """Fold eval-mode BN / bias / head-mean into affine scale-shift (or the FC0
    weight), build per-head projection tensors, the additive mask and the packed
    parameter slab."""
    heads = params["gat"][0]["att_src"].shape[0]
    mask_add = jnp.where(adj > 0.0, 0.0, _NEG_INF).astype(jnp.float32)

    packer = _SlabPacker()
    layout = {"gat": [], "fc": []}
    w3_list, feat_dims = [], []

    for p in params["gat"]:
        h, f = p["att_src"].shape
        k = p["w"].shape[0]
        # W [K, H*F] -> [H, K, F] (per-head weight stack, built once in the wrapper)
        w3_list.append(jnp.asarray(p["w"], jnp.float32).reshape(k, h, f).transpose(1, 0, 2))
        s = p["gamma"] / jnp.sqrt(p["var"] + _BN_EPS)          # [1, F]
        layout["gat"].append({
            "attd": packer.add(p["att_dst"]),
            "atts": packer.add(p["att_src"]),
            "scale": packer.add(s / float(h)),                 # folds head-mean
            "shift": packer.add((p["bias"] - p["mean"]) * s + p["beta"]),
        })
        feat_dims.append(f)

    fc_dims = []
    for kf, p in enumerate(params["fc"]):
        s = p["gamma"] / jnp.sqrt(p["var"] + _BN_EPS)
        if kf == 0:
            # no ELU between Linear0 and BN0 -> fold BN into the weight/bias
            layout["fc"].append({
                "w": packer.add(p["w"] * s),
                "b": packer.add((p["b"] - p["mean"]) * s + p["beta"]),
            })
        else:
            # ELU sits between Linear_k and BN_k -> keep BN as a trailing affine
            layout["fc"].append({
                "w": packer.add(p["w"]),
                "b": packer.add(p["b"]),
                "s": packer.add(s),
                "t": packer.add(p["beta"] - p["mean"] * s),
            })
        fc_dims.append(p["w"].shape[1])

    return mask_add, packer.finalize(), w3_list, layout, feat_dims, fc_dims, heads


def mincut_pooling_forward(x, adj, params):
    n = x.shape[0]
    mask_add, slab, w3_list, layout, feat_dims, fc_dims, heads = _fold_and_pack(params, adj)
    total = sum(fc_dims)
    out_pad = max(_LANES, ((total + _LANES - 1) // _LANES) * _LANES)

    kernel = _build_fused_kernel(num_nodes=n, heads=heads, feat_dims=feat_dims,
                                 fc_dims=fc_dims, layout=layout, out_pad=out_pad)

    args = (x.astype(jnp.float32), mask_add, slab, *w3_list)

    def _full_spec(arr):
        nd = arr.ndim
        return pl.BlockSpec(arr.shape, lambda i, _nd=nd: (0,) * _nd)

    slab_out = pl.pallas_call(
        kernel,
        out_shape=jax.ShapeDtypeStruct((n, out_pad), jnp.float32),
        grid=(1,),
        in_specs=[_full_spec(a) for a in args],
        out_specs=pl.BlockSpec((n, out_pad), lambda i: (0, 0)),
        compiler_params=pltpu.CompilerParams(dimension_semantics=("arbitrary",)),
    )(*args)

    outputs, off = [], 0
    for d in fc_dims:
        outputs.append(slab_out[:, off:off + d])
        off += d
    return outputs


# ----------------------------------------------------------------------------------
# Pure-JAX reference (unfused, unfolded) used only for a numerical self-check.
# ----------------------------------------------------------------------------------
def reference_forward(x, adj, params):
    for p in params["gat"]:
        h, f = p["att_src"].shape
        xp = x @ p["w"]
        xph = xp.reshape(x.shape[0], h, f)
        asrc = jnp.einsum("nhf,hf->nh", xph, p["att_src"])
        adst = jnp.einsum("nhf,hf->nh", xph, p["att_dst"])
        e = adst[:, None, :] + asrc[None, :, :]          # [i, j, h]
        e = jnp.where(e > 0.0, e, 0.2 * e)
        e = jnp.where(adj[:, :, None] > 0.0, e, _NEG_INF)
        e = e - e.max(axis=1, keepdims=True)
        pr = jnp.exp(e) * adj[:, :, None]
        alpha = pr / pr.sum(axis=1, keepdims=True)
        out = jnp.einsum("ijh,jhf->ihf", alpha, xph).mean(axis=1) + p["bias"]
        y = (out - p["mean"]) * p["gamma"] / jnp.sqrt(p["var"] + _BN_EPS) + p["beta"]
        x = _elu(y)
    outs = []
    for k, p in enumerate(params["fc"]):
        x = x @ p["w"] + p["b"]
        if k > 0:
            x = _elu(x)
        x = (x - p["mean"]) * p["gamma"] / jnp.sqrt(p["var"] + _BN_EPS) + p["beta"]
        outs.append(x)
    return outs


def init_params(key, in_dim, hidden_dims, out_dims, heads):
    params = {"gat": [], "fc": []}
    prev = in_dim
    for hd in hidden_dims:
        key, k1, k2, k3, k4, k5, k6, k7, k8 = jax.random.split(key, 9)
        params["gat"].append({
            "w": jax.random.normal(k1, (prev, heads * hd), jnp.float32) / jnp.sqrt(prev),
            "att_src": 0.1 * jax.random.normal(k2, (heads, hd), jnp.float32),
            "att_dst": 0.1 * jax.random.normal(k3, (heads, hd), jnp.float32),
            "bias": 0.1 * jax.random.normal(k4, (1, hd), jnp.float32),
            "gamma": 1.0 + 0.1 * jax.random.normal(k5, (1, hd), jnp.float32),
            "beta": 0.1 * jax.random.normal(k6, (1, hd), jnp.float32),
            "mean": 0.1 * jax.random.normal(k7, (1, hd), jnp.float32),
            "var": 1.0 + 0.1 * jnp.abs(jax.random.normal(k8, (1, hd), jnp.float32)),
        })
        prev = hd
    for od in out_dims:
        key, k1, k2, k3, k4, k5, k6 = jax.random.split(key, 7)
        params["fc"].append({
            "w": jax.random.normal(k1, (prev, od), jnp.float32) / jnp.sqrt(prev),
            "b": 0.1 * jax.random.normal(k2, (1, od), jnp.float32),
            "gamma": 1.0 + 0.1 * jax.random.normal(k3, (1, od), jnp.float32),
            "beta": 0.1 * jax.random.normal(k4, (1, od), jnp.float32),
            "mean": 0.1 * jax.random.normal(k5, (1, od), jnp.float32),
            "var": 1.0 + 0.1 * jnp.abs(jax.random.normal(k6, (1, od), jnp.float32)),
        })
        prev = od
    return params


if __name__ == "__main__":
    key = jax.random.PRNGKey(0)
    N, IN_DIM, HEADS = 32, 16, 4
    HIDDEN_DIMS = (32, 32)
    OUT_DIMS = (16, 8)          # number of microenvironment zones per head
    E = 96

    key, kx, ks, kd, kp = jax.random.split(key, 5)
    x = jax.random.normal(kx, (N, IN_DIM), jnp.float32)

    # synthetic edge_index [2, E]; densify to adjacency mask (glue, not hot path)
    src = jax.random.randint(ks, (E,), 0, N)
    dst = jax.random.randint(kd, (E,), 0, N)
    adj = jnp.zeros((N, N), jnp.float32)
    adj = adj.at[dst, src].set(1.0)                              # message edge j -> i
    adj = adj.at[jnp.arange(N), jnp.arange(N)].set(1.0)          # self-loops (GATConv default)

    params = init_params(kp, IN_DIM, HIDDEN_DIMS, OUT_DIMS, HEADS)

    fwd = jax.jit(mincut_pooling_forward)
    outputs = fwd(x, adj, params)
    for o in outputs:
        jax.block_until_ready(o)
    assert outputs[0].shape == (N, OUT_DIMS[0]) and outputs[1].shape == (N, OUT_DIMS[1])

    # numerical self-check against the straightforward JAX reference
    ref = reference_forward(x, adj, params)
    for o, r in zip(outputs, ref):
        err = float(jnp.max(jnp.abs(o - r)))
        assert err < 1e-3, f"kernel/reference mismatch: max abs err = {err}"

    print("KERNEL_OK")
</pallas_src>

<mosaic_0001>
module attributes {stable_mosaic.version = 11 : i64} {
  func.func @kernel(%arg0: i32, %arg1: memref<32x16xf32, #tpu.memory_space<vmem>>, %arg2: memref<32x32xf32, #tpu.memory_space<vmem>>, %arg3: memref<144x128xf32, #tpu.memory_space<vmem>>, %arg4: memref<4x16x32xf32, #tpu.memory_space<vmem>>, %arg5: memref<4x32x32xf32, #tpu.memory_space<vmem>>, %arg6: memref<32x128xf32, #tpu.memory_space<vmem>>) attributes {dimension_semantics = [#tpu.dimension_semantics<arbitrary>], iteration_bounds = array<i64: 1>, scalar_prefetch = 0 : i64, scratch_operands = 0 : i64, tpu.core_type = #tpu.core_type<tc>, window_params = [{pipeline_mode = #tpu.pipeline_mode<synchronous>, transform_indices = @transform_0, window_bounds = array<i64: 32, 16>}, {pipeline_mode = #tpu.pipeline_mode<synchronous>, transform_indices = @transform_1, window_bounds = array<i64: 32, 32>}, {pipeline_mode = #tpu.pipeline_mode<synchronous>, transform_indices = @transform_2, window_bounds = array<i64: 144, 128>}, {pipeline_mode = #tpu.pipeline_mode<synchronous>, transform_indices = @transform_3, window_bounds = array<i64: 4, 16, 32>}, {pipeline_mode = #tpu.pipeline_mode<synchronous>, transform_indices = @transform_4, window_bounds = array<i64: 4, 32, 32>}, {pipeline_mode = #tpu.pipeline_mode<synchronous>, transform_indices = @transform_5, window_bounds = array<i64: 32, 128>}]} {
    %c0 = arith.constant 0 : index
    %c0_0 = arith.constant 0 : index
    %0 = vector.load %arg2[%c0, %c0_0] : memref<32x32xf32, #tpu.memory_space<vmem>>, vector<32x32xf32>
    %c0_1 = arith.constant 0 : index
    %c0_2 = arith.constant 0 : index
    %1 = vector.load %arg1[%c0_1, %c0_2] : memref<32x16xf32, #tpu.memory_space<vmem>>, vector<32x16xf32>
    %c0_3 = arith.constant 0 : index
    %c0_4 = arith.constant 0 : index
    %c0_5 = arith.constant 0 : index
    %2 = vector.load %arg4[%c0_3, %c0_4, %c0_5] : memref<4x16x32xf32, #tpu.memory_space<vmem>>, vector<4x16x32xf32>
    %c0_6 = arith.constant 0 : index
    %c0_7 = arith.constant 0 : index
    %3 = vector.load %arg3[%c0_6, %c0_7] : memref<144x128xf32, #tpu.memory_space<vmem>>, vector<4x32xf32>
    %c8 = arith.constant 8 : index
    %c0_8 = arith.constant 0 : index
    %4 = vector.load %arg3[%c8, %c0_8] : memref<144x128xf32, #tpu.memory_space<vmem>>, vector<4x32xf32>
    %c16 = arith.constant 16 : index
    %c0_9 = arith.constant 0 : index
    %5 = vector.load %arg3[%c16, %c0_9] : memref<144x128xf32, #tpu.memory_space<vmem>>, vector<1x32xf32>
    %c24 = arith.constant 24 : index
    %c0_10 = arith.constant 0 : index
    %6 = vector.load %arg3[%c24, %c0_10] : memref<144x128xf32, #tpu.memory_space<vmem>>, vector<1x32xf32>
    %7 = vector.shape_cast %1 : vector<32x16xf32> to vector<1x32x16xf32>
    %8 = vector.shape_cast %7 : vector<1x32x16xf32> to vector<1x32x16xf32>
    %9 = vector.broadcast %8 : vector<1x32x16xf32> to vector<4x32x16xf32>
    "tpu.trace_start"() <{level = 10 : i32, message = "hnk,hkf->hnf"}> : () -> ()
    %cst = arith.constant dense<0.000000e+00> : vector<4x32x32xf32>
    %10 = tpu.matmul %9, %2, %cst {dimension_numbers = #tpu.dot_dimension_numbers<[2], [1], [1], [2], [0, 0, 0, 1, 1, 2], [0], [0]>} : vector<4x32x16xf32>, vector<4x16x32xf32>, vector<4x32x32xf32> -> vector<4x32x32xf32>
    "tpu.trace_stop"() : () -> ()
    %11 = vector.shape_cast %3 : vector<4x32xf32> to vector<4x1x32xf32>
    %12 = vector.broadcast %11 : vector<4x1x32xf32> to vector<4x32x32xf32>
    %13 = arith.mulf %10, %12 : vector<4x32x32xf32>
    %cst_11 = arith.constant dense<0.000000e+00> : vector<4x32xf32>
    %14 = vector.multi_reduction <add>, %13, %cst_11 [2] : vector<4x32x32xf32> to vector<4x32xf32>
    %15 = vector.shape_cast %14 : vector<4x32xf32> to vector<4x32x1xf32>
    %16 = vector.shape_cast %4 : vector<4x32xf32> to vector<4x1x32xf32>
    "tpu.trace_start"() <{level = 10 : i32, message = "hqf,hnf->hqn"}> : () -> ()
    %cst_12 = arith.constant dense<0.000000e+00> : vector<4x1x32xf32>
    %17 = tpu.matmul %16, %10, %cst_12 {dimension_numbers = #tpu.dot_dimension_numbers<[2], [2], [1], [1], [0, 0, 0, 1, 1, 1], [0], [0]>} : vector<4x1x32xf32>, vector<4x32x32xf32>, vector<4x1x32xf32> -> vector<4x1x32xf32>
    "tpu.trace_stop"() : () -> ()
    %18 = vector.broadcast %15 : vector<4x32x1xf32> to vector<4x32x32xf32>
    %19 = vector.broadcast %17 : vector<4x1x32xf32> to vector<4x32x32xf32>
    %20 = arith.addf %18, %19 : vector<4x32x32xf32>
    %cst_13 = arith.constant 0.000000e+00 : f32
    %21 = vector.broadcast %cst_13 : f32 to vector<4x32x32xf32>
    %22 = arith.cmpf ogt, %20, %21 : vector<4x32x32xf32>
    %cst_14 = arith.constant 2.000000e-01 : f32
    %23 = vector.broadcast %cst_14 : f32 to vector<4x32x32xf32>
    %24 = arith.mulf %23, %20 : vector<4x32x32xf32>
    %25 = arith.select %22, %20, %24 : vector<4x32x32xi1>, vector<4x32x32xf32>
    %26 = vector.shape_cast %0 : vector<32x32xf32> to vector<1x32x32xf32>
    %27 = vector.broadcast %26 : vector<1x32x32xf32> to vector<4x32x32xf32>
    %28 = arith.addf %25, %27 : vector<4x32x32xf32>
    %cst_15 = arith.constant dense<0xFF800000> : vector<4x32xf32>
    %29 = vector.multi_reduction <maximumf>, %28, %cst_15 [2] : vector<4x32x32xf32> to vector<4x32xf32>
    %30 = vector.shape_cast %29 : vector<4x32xf32> to vector<4x32x1xf32>
    %31 = vector.broadcast %30 : vector<4x32x1xf32> to vector<4x32x32xf32>
    %32 = arith.subf %28, %31 : vector<4x32x32xf32>
    %33 = math.exp %32 : vector<4x32x32xf32>
    %cst_16 = arith.constant dense<0.000000e+00> : vector<4x32xf32>
    %34 = vector.multi_reduction <add>, %33, %cst_16 [2] : vector<4x32x32xf32> to vector<4x32xf32>
    %35 = vector.shape_cast %34 : vector<4x32xf32> to vector<4x32x1xf32>
    %36 = vector.broadcast %35 : vector<4x32x1xf32> to vector<4x32x32xf32>
    %37 = arith.divf %33, %36 : vector<4x32x32xf32>
    "tpu.trace_start"() <{level = 10 : i32, message = "hij,hjf->hif"}> : () -> ()
    %cst_17 = arith.constant dense<0.000000e+00> : vector<4x32x32xf32>
    %38 = tpu.matmul %37, %10, %cst_17 {dimension_numbers = #tpu.dot_dimension_numbers<[2], [1], [1], [2], [0, 0, 0, 1, 1, 2], [0], [0]>} : vector<4x32x32xf32>, vector<4x32x32xf32>, vector<4x32x32xf32> -> vector<4x32x32xf32>
    "tpu.trace_stop"() : () -> ()
    %cst_18 = arith.constant dense<0.000000e+00> : vector<32x32xf32>
    %39 = vector.multi_reduction <add>, %38, %cst_18 [0] : vector<4x32x32xf32> to vector<32x32xf32>
    %40 = vector.broadcast %5 : vector<1x32xf32> to vector<32x32xf32>
    %41 = arith.mulf %39, %40 : vector<32x32xf32>
    %42 = vector.broadcast %6 : vector<1x32xf32> to vector<32x32xf32>
    %43 = arith.addf %41, %42 : vector<32x32xf32>
    %cst_19 = arith.constant 0.000000e+00 : f32
    %44 = vector.broadcast %cst_19 : f32 to vector<32x32xf32>
    %45 = arith.cmpf ogt, %43, %44 : vector<32x32xf32>
    %cst_20 = arith.constant 0.000000e+00 : f32
    %46 = vector.broadcast %cst_20 : f32 to vector<32x32xf32>
    %47 = arith.minimumf %43, %46 : vector<32x32xf32>
    %48 = math.exp %47 : vector<32x32xf32>
    %cst_21 = arith.constant 1.000000e+00 : f32
    %49 = vector.broadcast %cst_21 : f32 to vector<32x32xf32>
    %50 = arith.subf %48, %49 : vector<32x32xf32>
    %51 = arith.select %45, %43, %50 : vector<32x32xi1>, vector<32x32xf32>
    %c0_22 = arith.constant 0 : index
    %c0_23 = arith.constant 0 : index
    %c0_24 = arith.constant 0 : index
    %52 = vector.load %arg5[%c0_22, %c0_23, %c0_24] : memref<4x32x32xf32, #tpu.memory_space<vmem>>, vector<4x32x32xf32>
    %c32 = arith.constant 32 : index
    %c0_25 = arith.constant 0 : index
    %53 = vector.load %arg3[%c32, %c0_25] : memref<144x128xf32, #tpu.memory_space<vmem>>, vector<4x32xf32>
    %c40 = arith.constant 40 : index
    %c0_26 = arith.constant 0 : index
    %54 = vector.load %arg3[%c40, %c0_26] : memref<144x128xf32, #tpu.memory_space<vmem>>, vector<4x32xf32>
    %c48 = arith.constant 48 : index
    %c0_27 = arith.constant 0 : index
    %55 = vector.load %arg3[%c48, %c0_27] : memref<144x128xf32, #tpu.memory_space<vmem>>, vector<1x32xf32>
    %c56 = arith.constant 56 : index
    %c0_28 = arith.constant 0 : index
    %56 = vector.load %arg3[%c56, %c0_28] : memref<144x128xf32, #tpu.memory_space<vmem>>, vector<1x32xf32>
    %57 = vector.shape_cast %51 : vector<32x32xf32> to vector<1x32x32xf32>
    %58 = vector.shape_cast %57 : vector<1x32x32xf32> to vector<1x32x32xf32>
    %59 = vector.broadcast %58 : vector<1x32x32xf32> to vector<4x32x32xf32>
    "tpu.trace_start"() <{level = 10 : i32, message = "hnk,hkf->hnf"}> : () -> ()
    %cst_29 = arith.constant dense<0.000000e+00> : vector<4x32x32xf32>
    %60 = tpu.matmul %59, %52, %cst_29 {dimension_numbers = #tpu.dot_dimension_numbers<[2], [1], [1], [2], [0, 0, 0, 1, 1, 2], [0], [0]>} : vector<4x32x32xf32>, vector<4x32x32xf32>, vector<4x32x32xf32> -> vector<4x32x32xf32>
    "tpu.trace_stop"() : () -> ()
    %61 = vector.shape_cast %53 : vector<4x32xf32> to vector<4x1x32xf32>
    %62 = vector.broadcast %61 : vector<4x1x32xf32> to vector<4x32x32xf32>
    %63 = arith.mulf %60, %62 : vector<4x32x32xf32>
    %cst_30 = arith.constant dense<0.000000e+00> : vector<4x32xf32>
    %64 = vector.multi_reduction <add>, %63, %cst_30 [2] : vector<4x32x32xf32> to vector<4x32xf32>
    %65 = vector.shape_cast %64 : vector<4x32xf32> to vector<4x32x1xf32>
    %66 = vector.shape_cast %54 : vector<4x32xf32> to vector<4x1x32xf32>
    "tpu.trace_start"() <{level = 10 : i32, message = "hqf,hnf->hqn"}> : () -> ()
    %cst_31 = arith.constant dense<0.000000e+00> : vector<4x1x32xf32>
    %67 = tpu.matmul %66, %60, %cst_31 {dimension_numbers = #tpu.dot_dimension_numbers<[2], [2], [1], [1], [0, 0, 0, 1, 1, 1], [0], [0]>} : vector<4x1x32xf32>, vector<4x32x32xf32>, vector<4x1x32xf32> -> vector<4x1x32xf32>
    "tpu.trace_stop"() : () -> ()
    %68 = vector.broadcast %65 : vector<4x32x1xf32> to vector<4x32x32xf32>
    %69 = vector.broadcast %67 : vector<4x1x32xf32> to vector<4x32x32xf32>
    %70 = arith.addf %68, %69 : vector<4x32x32xf32>
    %cst_32 = arith.constant 0.000000e+00 : f32
    %71 = vector.broadcast %cst_32 : f32 to vector<4x32x32xf32>
    %72 = arith.cmpf ogt, %70, %71 : vector<4x32x32xf32>
    %cst_33 = arith.constant 2.000000e-01 : f32
    %73 = vector.broadcast %cst_33 : f32 to vector<4x32x32xf32>
    %74 = arith.mulf %73, %70 : vector<4x32x32xf32>
    %75 = arith.select %72, %70, %74 : vector<4x32x32xi1>, vector<4x32x32xf32>
    %76 = vector.shape_cast %0 : vector<32x32xf32> to vector<1x32x32xf32>
    %77 = vector.broadcast %76 : vector<1x32x32xf32> to vector<4x32x32xf32>
    %78 = arith.addf %75, %77 : vector<4x32x32xf32>
    %cst_34 = arith.constant dense<0xFF800000> : vector<4x32xf32>
    %79 = vector.multi_reduction <maximumf>, %78, %cst_34 [2] : vector<4x32x32xf32> to vector<4x32xf32>
    %80 = vector.shape_cast %79 : vector<4x32xf32> to vector<4x32x1xf32>
    %81 = vector.broadcast %80 : vector<4x32x1xf32> to vector<4x32x32xf32>
    %82 = arith.subf %78, %81 : vector<4x32x32xf32>
    %83 = math.exp %82 : vector<4x32x32xf32>
    %cst_35 = arith.constant dense<0.000000e+00> : vector<4x32xf32>
    %84 = vector.multi_reduction <add>, %83, %cst_35 [2] : vector<4x32x32xf32> to vector<4x32xf32>
    %85 = vector.shape_cast %84 : vector<4x32xf32> to vector<4x32x1xf32>
    %86 = vector.broadcast %85 : vector<4x32x1xf32> to vector<4x32x32xf32>
    %87 = arith.divf %83, %86 : vector<4x32x32xf32>
    "tpu.trace_start"() <{level = 10 : i32, message = "hij,hjf->hif"}> : () -> ()
    %cst_36 = arith.constant dense<0.000000e+00> : vector<4x32x32xf32>
    %88 = tpu.matmul %87, %60, %cst_36 {dimension_numbers = #tpu.dot_dimension_numbers<[2], [1], [1], [2], [0, 0, 0, 1, 1, 2], [0], [0]>} : vector<4x32x32xf32>, vector<4x32x32xf32>, vector<4x32x32xf32> -> vector<4x32x32xf32>
    "tpu.trace_stop"() : () -> ()
    %cst_37 = arith.constant dense<0.000000e+00> : vector<32x32xf32>
    %89 = vector.multi_reduction <add>, %88, %cst_37 [0] : vector<4x32x32xf32> to vector<32x32xf32>
    %90 = vector.broadcast %55 : vector<1x32xf32> to vector<32x32xf32>
    %91 = arith.mulf %89, %90 : vector<32x32xf32>
    %92 = vector.broadcast %56 : vector<1x32xf32> to vector<32x32xf32>
    %93 = arith.addf %91, %92 : vector<32x32xf32>
    %cst_38 = arith.constant 0.000000e+00 : f32
    %94 = vector.broadcast %cst_38 : f32 to vector<32x32xf32>
    %95 = arith.cmpf ogt, %93, %94 : vector<32x32xf32>
    %cst_39 = arith.constant 0.000000e+00 : f32
    %96 = vector.broadcast %cst_39 : f32 to vector<32x32xf32>
    %97 = arith.minimumf %93, %96 : vector<32x32xf32>
    %98 = math.exp %97 : vector<32x32xf32>
    %cst_40 = arith.constant 1.000000e+00 : f32
    %99 = vector.broadcast %cst_40 : f32 to vector<32x32xf32>
    %100 = arith.subf %98, %99 : vector<32x32xf32>
    %101 = arith.select %95, %93, %100 : vector<32x32xi1>, vector<32x32xf32>
    %c64 = arith.constant 64 : index
    %c0_41 = arith.constant 0 : index
    %102 = vector.load %arg3[%c64, %c0_41] : memref<144x128xf32, #tpu.memory_space<vmem>>, vector<32x16xf32>
    %c96 = arith.constant 96 : index
    %c0_42 = arith.constant 0 : index
    %103 = vector.load %arg3[%c96, %c0_42] : memref<144x128xf32, #tpu.memory_space<vmem>>, vector<1x16xf32>
    %cst_43 = arith.constant dense<0.000000e+00> : vector<32x16xf32>
    %104 = tpu.matmul %101, %102, %cst_43 {dimension_numbers = #tpu.dot_dimension_numbers<[1], [0], [0], [1], [0, 0, 1, 1], [], []>} : vector<32x32xf32>, vector<32x16xf32>, vector<32x16xf32> -> vector<32x16xf32>
    %105 = vector.broadcast %103 : vector<1x16xf32> to vector<32x16xf32>
    %106 = arith.addf %104, %105 : vector<32x16xf32>
    %c104 = arith.constant 104 : index
    %c0_44 = arith.constant 0 : index
    %107 = vector.load %arg3[%c104, %c0_44] : memref<144x128xf32, #tpu.memory_space<vmem>>, vector<16x8xf32>
    %c120 = arith.constant 120 : index
    %c0_45 = arith.constant 0 : index
    %108 = vector.load %arg3[%c120, %c0_45] : memref<144x128xf32, #tpu.memory_space<vmem>>, vector<1x8xf32>
    %cst_46 = arith.constant dense<0.000000e+00> : vector<32x8xf32>
    %109 = tpu.matmul %106, %107, %cst_46 {dimension_numbers = #tpu.dot_dimension_numbers<[1], [0], [0], [1], [0, 0, 1, 1], [], []>} : vector<32x16xf32>, vector<16x8xf32>, vector<32x8xf32> -> vector<32x8xf32>
    %110 = vector.broadcast %108 : vector<1x8xf32> to vector<32x8xf32>
    %111 = arith.addf %109, %110 : vector<32x8xf32>
    %c128 = arith.constant 128 : index
    %c0_47 = arith.constant 0 : index
    %112 = vector.load %arg3[%c128, %c0_47] : memref<144x128xf32, #tpu.memory_space<vmem>>, vector<1x8xf32>
    %c136 = arith.constant 136 : index
    %c0_48 = arith.constant 0 : index
    %113 = vector.load %arg3[%c136, %c0_48] : memref<144x128xf32, #tpu.memory_space<vmem>>, vector<1x8xf32>
    %cst_49 = arith.constant 0.000000e+00 : f32
    %114 = vector.broadcast %cst_49 : f32 to vector<32x8xf32>
    %115 = arith.cmpf ogt, %111, %114 : vector<32x8xf32>
    %cst_50 = arith.constant 0.000000e+00 : f32
    %116 = vector.broadcast %cst_50 : f32 to vector<32x8xf32>
    %117 = arith.minimumf %111, %116 : vector<32x8xf32>
    %118 = math.exp %117 : vector<32x8xf32>
    %cst_51 = arith.constant 1.000000e+00 : f32
    %119 = vector.broadcast %cst_51 : f32 to vector<32x8xf32>
    %120 = arith.subf %118, %119 : vector<32x8xf32>
    %121 = arith.select %115, %111, %120 : vector<32x8xi1>, vector<32x8xf32>
    %122 = vector.broadcast %112 : vector<1x8xf32> to vector<32x8xf32>
    %123 = arith.mulf %121, %122 : vector<32x8xf32>
    %124 = vector.broadcast %113 : vector<1x8xf32> to vector<32x8xf32>
    %125 = arith.addf %123, %124 : vector<32x8xf32>
    %cst_52 = arith.constant 0.000000e+00 : f32
    %126 = vector.broadcast %cst_52 : f32 to vector<32x104xf32>
    %127 = tpu.concatenate %106, %125, %126 in 1 : vector<32x16xf32>, vector<32x8xf32>, vector<32x104xf32> -> vector<32x128xf32>
    %c0_53 = arith.constant 0 : index
    %c0_54 = arith.constant 0 : index
    %128 = vector.load %arg6[%c0_53, %c0_54] : memref<32x128xf32, #tpu.memory_space<vmem>>, vector<32x128xf32>
    tpu.vector_store %arg6[%c0_53, %c0_54], %127 {strides = array<i32>} : memref<32x128xf32, #tpu.memory_space<vmem>>, vector<32x128xf32>,
    return
  }
  func.func @transform_0(%arg0: i32) -> (i32, i32) {
    %c0_i32 = arith.constant 0 : i32
    %c0_i32_0 = arith.constant 0 : i32
    %c0_i32_1 = arith.constant 0 : i32
    return %c0_i32, %c0_i32_0 : i32, i32
  }
  func.func @transform_1(%arg0: i32) -> (i32, i32) {
    %c0_i32 = arith.constant 0 : i32
    %c0_i32_0 = arith.constant 0 : i32
    %c0_i32_1 = arith.constant 0 : i32
    return %c0_i32, %c0_i32_0 : i32, i32
  }
  func.func @transform_2(%arg0: i32) -> (i32, i32) {
    %c0_i32 = arith.constant 0 : i32
    %c0_i32_0 = arith.constant 0 : i32
    %c0_i32_1 = arith.constant 0 : i32
    return %c0_i32, %c0_i32_0 : i32, i32
  }
  func.func @transform_3(%arg0: i32) -> (i32, i32, i32) {
    %c0_i32 = arith.constant 0 : i32
    %c0_i32_0 = arith.constant 0 : i32
    %c0_i32_1 = arith.constant 0 : i32
    %c0_i32_2 = arith.constant 0 : i32
    return %c0_i32, %c0_i32_0, %c0_i32_1 : i32, i32, i32
  }
  func.func @transform_4(%arg0: i32) -> (i32, i32, i32) {
    %c0_i32 = arith.constant 0 : i32
    %c0_i32_0 = arith.constant 0 : i32
    %c0_i32_1 = arith.constant 0 : i32
    %c0_i32_2 = arith.constant 0 : i32
    return %c0_i32, %c0_i32_0, %c0_i32_1 : i32, i32, i32
  }
  func.func @transform_5(%arg0: i32) -> (i32, i32) {
    %c0_i32 = arith.constant 0 : i32
    %c0_i32_0 = arith.constant 0 : i32
    %c0_i32_1 = arith.constant 0 : i32
    return %c0_i32, %c0_i32_0 : i32, i32
  }
}

</mosaic_0001>

<bundles_post_ra>
// kernel: mincut_pooling_forward.1
= control target key start
LH: loop header
LB: loop body
LE: loop exit
PB: predicated region body
PF: predicated region fallthrough
CT: control target
= control target key end

     0   :  { %vm40_vm0 = vcmask 130048   ;;  %v4426_v16 = vmov 0.0|0.0   ;;  %vm4427_vm1 = vmmov 0   ;;  %v4428_v17 = vmov 0.0   ;;  %s5366_s3 = inlined_call_operand.vmem [shape: f32[4,16,32], index: 3, kind: input, shape index: {}]   ;;  %s5367_s0 = inlined_call_operand.vmem [shape: f32[32,16], index: 0, kind: input, shape index: {}]   ;;  %s5368_s2 = inlined_call_operand.vmem [shape: f32[144,128], index: 2, kind: input, shape index: {}]   ;;  %s5369_s1 = inlined_call_operand.vmem [shape: f32[32,32], index: 1, kind: input, shape index: {}]   ;;  %s5370_s4 = inlined_call_operand.vmem [shape: f32[4,32,32], index: 4, kind: input, shape index: {}]   ;;  %s5371_s5 = inlined_call_operand.vmem [shape: f32[32,128], index: 5, kind: output, shape index: {}]  }
   0x1   :  { %v28_v0 = vld [vmem:[%s5366_s3] sm:$0xff]  ;;  %v29_v1 = vld [vmem:[%s5366_s3 + $0x8] sm:$0xff]  ;;  %v30_v2 = vld [vmem:[%s5366_s3 + $0x10] sm:$0xff]  ;;  %v4429_v18 = vmov 1966171168   ;;  %v405_v20 = vlaneseq  ;;  %vm454_vm2 = vcmask 261120  }
   0x2   :  { %v4077_v3 = vpack.c.bf16 %v29_v1, %v28_v0  ;;  %v31_v4 = vld [vmem:[%s5366_s3 + $0x18] sm:$0xff]  ;;  %v24_v5 = vld [vmem:[%s5367_s0] sm:$0xff]  ;;  %v33_v8 = vld [vmem:[%s5366_s3 + $0x28] sm:$0xff]  ;;  %v403_v19 = vunpack.c.l.s4 %v4429_v18 }
   0x3   :  { %v4081_v6 = vpack.c.bf16 %v31_v4, %v30_v2  ;;  %3761 = vmatprep.mubr.msk.f32.mxu0 %vm40_vm0, %v24_v5  ;;  %3771 = vmatprep.mubr.msk.f32.mxu1 %vm40_vm0, %v24_v5  ;;  %v32_v7 = vld [vmem:[%s5366_s3 + $0x20] sm:$0xff]  ;;  %v34_v9 = vld [vmem:[%s5366_s3 + $0x30] sm:$0xff]  ;;  %v35_v10 = vld [vmem:[%s5366_s3 + $0x38] sm:$0xff]  ;;  %v406_v22 = vshrl.u32 %v405_v20, 7 }
   0x4   :  { %4078 = vmatprep.subr.bf16.mxu0 %v4077_v3  ;;  %v25_v11 = vld [vmem:[%s5367_s0 + $0x8] sm:$0xff]  ;;  %v4085_v12 = vpack.c.bf16 %v33_v8, %v32_v7  ;;  %v4089_v13 = vpack.c.bf16 %v35_v10, %v34_v9  ;;  %v26_v14 = vld [vmem:[%s5367_s0 + $0x10] sm:$0xff]  ;;  %v27_v15 = vld [vmem:[%s5367_s0 + $0x18] sm:$0xff]  ;;  %v404_v21 = vunpack.c.0.s8 %v403_v19  ;;  %s4430_s0 = smov 16  }
   0x5   :  { %4082 = vmatprep.subr.bf16.mxu1 %v4081_v6  ;;  %4080 = vmatpush3.bf16.msra.mxu0 %v4077_v3  ;;  %v3463_v23 = vld.sshfl [vmem:[%s5368_s2] sm:$0x33 pattern:$0x75316420]  ;;  %v4525_v27 = vsub.s32 0, %v406_v22  ;;  %vm4532_vm3 = vmpackc.low %vm454_vm2, %vm454_vm2 }
   0x6   :  { %4084 = vmatpush3.bf16.msra.mxu1 %v4081_v6  ;;  %4086 = vmatprep.subr.bf16.mxu0 %v4085_v12  ;;  %v4522_v24 = vsub.s32 %v404_v21, %v406_v22  ;;  %v401_v25 = vcombine.high %v3463_v23, %v3463_v23  ;;  %v3464_v56 = vld.sshfl [vmem:[%s5368_s2 + $0x8] sm:$0x33 pattern:$0x75316420] }
   0x7   :  { %4090 = vmatprep.subr.bf16.mxu1 %v4089_v13  ;;  %v511_v4 = vcombine.high %v3464_v56, %v3464_v56 }
   0x8   :  { %3762 = vmatmul.mubr.msk.f32.vlgmr.msra.gmra.mrb[0].mxu0 %vm40_vm0, %v25_v11  ;;  %v408_v26 = vrot.slane %v3463_v23, %v4522_v24  ;;  %v415_v28 = vrot.slane %v401_v25, %v4522_v24 }
   0x9   :  { %3772 = vmatmul.mubr.msk.f32.vlgmr.msra.gmra.mrb[0].mxu1 %vm40_vm0, %v25_v11  ;;  %3764 = vmatprep.mubr.msk.f32.mxu0 %vm40_vm0, %v26_v14  ;;  %v525_v19 = vrot.slane %v511_v4, %v4522_v24 }
   0xa   :  { %3774 = vmatprep.mubr.msk.f32.mxu1 %vm40_vm0, %v26_v14  ;;  %4088 = vmatpush3.bf16.msra.mxu0 %v4085_v12  ;;  %v421_v29 = vrot.slane %v408_v26, %v4525_v27  ;;  %v425_v30 = vrot.slane %v415_v28, %v4525_v27  ;;  %v416_v47 = vcombine.high %v408_v26, %v408_v26 }
   0xb   :  { %4092 = vmatpush3.bf16.msra.mxu1 %v4089_v13  ;;  %4093 = vmatprep.subr.bf16.mxu0 %v4426_v16  ;;  %v417_v60 = vcombine.high %v415_v28, %v415_v28 }
   0xc   :  { %3765 = vmatmul.mubr.msk.f32.gmra.mrb[2].mxu0 %vm40_vm0, %v27_v15  ;;  %4101 = vmatprep.subr.bf16.mxu1 %v4426_v16  ;;  %v429_v0 = vrot.slane %v416_v47, %v4525_v27 }
   0xd   :  { %3775 = vmatmul.mubr.msk.f32.gmra.mrb[2].mxu1 %vm40_vm0, %v27_v15  ;;  %3781 = vmatprep.mubr.msk.f32.mxu0 %vm40_vm0, %v24_v5  ;;  %v433_v10 = vrot.slane %v417_v60, %v4525_v27 }
   0xe   :  { %3791 = vmatprep.mubr.msk.f32.mxu1 %vm40_vm0, %v24_v5 }
  0x10   :  { %3782 = vmatmul.mubr.msk.f32.vlgmr.msra.gmra.mrb[4].mxu0 %vm40_vm0, %v25_v11 }
  0x11   :  { %3792 = vmatmul.mubr.msk.f32.vlgmr.msra.gmra.mrb[4].mxu1 %vm40_vm0, %v25_v11  ;;  %3784 = vmatprep.mubr.msk.f32.mxu0 %vm40_vm0, %v26_v14 }
  0x12   :  { %3794 = vmatprep.mubr.msk.f32.mxu1 %vm40_vm0, %v26_v14 }
  0x14   :  { %3785 = vmatmul.mubr.msk.f32.gmra.mrb[6].mxu0 %vm40_vm0, %v27_v15 }
  0x15   :  { %3795 = vmatmul.mubr.msk.f32.gmra.mrb[6].mxu1 %vm40_vm0, %v27_v15  ;;  %3805 = vmatprep.mubr.msk.f32.mxu0 %vm4427_vm1, %v4428_v17  ;;  %v518_v15 = vrot.slane %v3464_v56, %v4522_v24 }
  0x16   :  { %3816 = vmatprep.mubr.msk.f32.mxu1 %vm4427_vm1, %v4428_v17 }
  0xdb   :  { %v3763_v31 = vpop.f32.mrb[0].mxu0 }
  0xdc   :  { %v3773_v32 = vpop.f32.mrb[0].mxu1  ;;  %v119_v33 = vpop.f32.mrb[1].mxu0  ;;  %v439_v35 = vmul.f32 %v3763_v31, %v421_v29 }
  0xdd   :  { %v4536_v36 = vpack.c.bf16 %v3763_v31, %v119_v33  ;;  %v204_v37 = vpop.f32.mrb[1].mxu1  ;;  %v443_v38 = vmul.f32 %v3773_v32, %v425_v30  ;;  %v438_v39 = vmul.f32 %v421_v29, %v119_v33 }
  0xde   :  { %v442_v40 = vmul.f32 %v425_v30, %v204_v37  ;;  %v4538_v41 = vpack.c.bf16 %v3773_v32, %v204_v37  ;;  %v458_v42 = vsel %vm454_vm2, %v439_v35, 0.0 }
  0xdf   :  { %v470_v43 = vsel %vm454_vm2, %v443_v38, 0.0  ;;  %459 = vadd.xlane.f32.xlu0 %v458_v42  ;;  %4096 = vmatpush3.bf16.xpose.msk.msra.mxu0 %vm4532_vm3, %v4536_v36  ;;  %v3766_v44 = vpop.f32.mrb[2].mxu0  ;;  %v455_v53 = vsel %vm454_vm2, %v438_v39, 0.0  ;;  %v526_v38 = vcombine.high %v518_v15, %v518_v15  ;;  %v527_v39 = vcombine.high %v525_v19, %v525_v19 }
  0xe0   :  { %471 = vadd.xlane.f32.xlu1 %v470_v43  ;;  %4104 = vmatpush3.bf16.xpose.msk.msra.mxu1 %vm4532_vm3, %v4538_v41  ;;  %v3776_v45 = vpop.f32.mrb[2].mxu1  ;;  %v129_v46 = vpop.f32.mrb[3].mxu0  ;;  %v441_v48 = vmul.f32 %v3766_v44, %v421_v29  ;;  %v467_v49 = vsel %vm454_vm2, %v442_v40, 0.0 }
  0xe1   :  { %v440_v50 = vmul.f32 %v421_v29, %v129_v46  ;;  %v4549_v51 = vpack.c.bf16 %v3766_v44, %v129_v46  ;;  %v214_v52 = vpop.f32.mrb[3].mxu1  ;;  %4097 = vmatprep.subr.bf16.mxu0 %v4426_v16  ;;  %4105 = vmatprep.subr.bf16.mxu1 %v4426_v16  ;;  %v445_v62 = vmul.f32 %v3776_v45, %v425_v30 }
  0xe2   :  { %v4554_v54 = vpack.c.bf16 %v3776_v45, %v214_v52  ;;  %v444_v57 = vmul.f32 %v425_v30, %v214_v52  ;;  %v464_v63 = vsel %vm454_vm2, %v441_v48, 0.0 }
  0xe3   :  { %456 = vadd.xlane.f32.xlu0 %v455_v53  ;;  %v3783_v55 = vpop.f32.mrb[4].mxu0  ;;  %v461_v58 = vsel %vm454_vm2, %v440_v50, 0.0  ;;  %v476_v11 = vsel %vm454_vm2, %v445_v62, 0.0 }
  0xe4   :  { %468 = vadd.xlane.f32.xlu1 %v467_v49  ;;  %v3793_v59 = vpop.f32.mrb[4].mxu1  ;;  %v289_v61 = vpop.f32.mrb[5].mxu0  ;;  %v473_v6 = vsel %vm454_vm2, %v444_v57, 0.0  ;;  %v447_v9 = vmul.f32 %v3783_v55, %v429_v0 }
  0xe5   :  { %v4562_v1 = vpack.c.bf16 %v3783_v55, %v289_v61  ;;  %v374_v2 = vpop.f32.mrb[5].mxu1  ;;  %v446_v14 = vmul.f32 %v429_v0, %v289_v61  ;;  %v451_v20 = vmul.f32 %v3793_v59, %v433_v10 }
  0xe6   :  { %v4564_v3 = vpack.c.bf16 %v3793_v59, %v374_v2  ;;  %v482_v21 = vsel %vm454_vm2, %v447_v9, 0.0  ;;  %v450_v22 = vmul.f32 %v433_v10, %v374_v2  ;;  %v4635_v59 = vld [vmem:[%s5369_s1] sm:$0xff] }
  0xe7   :  { %4100 = vmatpush3.bf16.xpose.msk.msra.mxu0 %vm4532_vm3, %v4549_v51  ;;  %462 = vadd.xlane.f32.xlu0 %v461_v58  ;;  %v3786_v5 = vpop.f32.mrb[6].mxu0  ;;  %v479_v23 = vsel %vm454_vm2, %v446_v14, 0.0  ;;  %v494_v26 = vsel %vm454_vm2, %v451_v20, 0.0  ;;  %v4630_v58 = vld [vmem:[%s5369_s1 + $0x8] sm:$0xff] }
  0xe8   :  { %4108 = vmatpush3.bf16.xpose.msk.msra.mxu1 %vm4532_vm3, %v4554_v54  ;;  %465 = vadd.xlane.f32.xlu1 %v464_v63  ;;  %v3796_v7 = vpop.f32.mrb[6].mxu1  ;;  %v299_v8 = vpop.f32.mrb[7].mxu0  ;;  %v449_v25 = vmul.f32 %v3786_v5, %v429_v0  ;;  %v491_v28 = vsel %vm454_vm2, %v450_v22, 0.0 }
  0xe9   :  { %4109 = vmatprep.subr.bf16.mxu0 %v4426_v16  ;;  %4117 = vmatprep.subr.bf16.mxu1 %v4426_v16  ;;  %v4577_v12 = vpack.c.bf16 %v3786_v5, %v299_v8  ;;  %v384_v13 = vpop.f32.mrb[7].mxu1  ;;  %v448_v29 = vmul.f32 %v429_v0, %v299_v8  ;;  %v453_v30 = vmul.f32 %v3796_v7, %v433_v10 }
  0xea   :  { %v4580_v18 = vpack.c.bf16 %v3796_v7, %v384_v13  ;;  %v488_v31 = vsel %vm454_vm2, %v449_v25, 0.0  ;;  %v452_v32 = vmul.f32 %v433_v10, %v384_v13 }
  0xeb   :  { %474 = vadd.xlane.f32.xlu0 %v473_v6  ;;  %v485_v33 = vsel %vm454_vm2, %v448_v29, 0.0  ;;  %v500_v35 = vsel %vm454_vm2, %v453_v30, 0.0 }
  0xec   :  { %477 = vadd.xlane.f32.xlu1 %v476_v11  ;;  %v497_v37 = vsel %vm454_vm2, %v452_v32, 0.0 }
  0xee   :  { %3806 = vmatmul.mubr.msk.f32.vlgmr.msra.gmra.mrb[8].mxu0 %vm454_vm2, %v518_v15 }
  0xef   :  { %3817 = vmatmul.mubr.msk.f32.vlgmr.msra.gmra.mrb[8].mxu1 %vm454_vm2, %v525_v19  ;;  %4112 = vmatpush3.bf16.xpose.msk.msra.mxu0 %vm4532_vm3, %v4562_v1 }
  0xf0   :  { %4120 = vmatpush3.bf16.xpose.msk.msra.mxu1 %vm4532_vm3, %v4564_v3  ;;  %483 = vadd.xlane.f32.xlu1 %v482_v21 }
  0xf1   :  { %480 = vadd.xlane.f32.xlu0 %v479_v23  ;;  %4113 = vmatprep.subr.bf16.mxu0 %v4426_v16  ;;  %v4656_v23 = vld [vmem:[%s5369_s1 + $0x18] sm:$0xff] }
  0xf2   :  { %4121 = vmatprep.subr.bf16.mxu1 %v4426_v16  ;;  %3827 = vmatprep.mubr.msk.f32.mxu0 %vm4427_vm1, %v4428_v17 }
  0xf3   :  { %3838 = vmatprep.mubr.msk.f32.mxu1 %vm4427_vm1, %v4428_v17 }
  0xf4   :  { %495 = vadd.xlane.f32.xlu1 %v494_v26 }
  0xf5   :  { %492 = vadd.xlane.f32.xlu0 %v491_v28  ;;  %v4661_v28 = vld [vmem:[%s5369_s1 + $0x10] sm:$0xff] }
  0xf7   :  { %4116 = vmatpush3.bf16.xpose.msk.msra.mxu0 %vm4532_vm3, %v4577_v12 }
  0xf8   :  { %4124 = vmatpush3.bf16.xpose.msk.msra.mxu1 %vm4532_vm3, %v4580_v18  ;;  %489 = vadd.xlane.f32.xlu1 %v488_v31 }
  0xf9   :  { %486 = vadd.xlane.f32.xlu0 %v485_v33  ;;  %4126 = vmatprep.subr.bf16.mxu0 %v4536_v36 }
  0xfa   :  { %4134 = vmatprep.subr.bf16.mxu1 %v4538_v41 }
  0xfc   :  { %501 = vadd.xlane.f32.xlu1 %v500_v35 }
  0xfd   :  { %498 = vadd.xlane.f32.xlu0 %v497_v37 }
  0xfe   :  { %3828 = vmatmul.mubr.msk.f32.vlgmr.msra.gmra.mrb[10].mxu0 %vm454_vm2, %v526_v38 }
  0xff   :  { %3839 = vmatmul.mubr.msk.f32.vlgmr.msra.gmra.mrb[10].mxu1 %vm454_vm2, %v527_v39  ;;  %4128 = vmatpush3.bf16.msra.mxu0 %v4536_v36 }
 0x100   :  { %4136 = vmatpush3.bf16.msra.mxu1 %v4538_v41  ;;  %4130 = vmatprep.subr.bf16.mxu0 %v4549_v51 }
 0x101   :  { %4138 = vmatprep.subr.bf16.mxu1 %v4554_v54 }
 0x103   :  { %4132 = vmatpush3.bf16.msra.mxu0 %v4549_v51 }
 0x104   :  { %4140 = vmatpush3.bf16.msra.mxu1 %v4554_v54  ;;  %4142 = vmatprep.subr.bf16.mxu0 %v4562_v1 }
 0x105   :  { %4150 = vmatprep.subr.bf16.mxu1 %v4564_v3 }
 0x16c   :  { %v460_v42 = vpop.xlane.xlu0 %459 }
 0x16d   :  { %v472_v40 = vpop.xlane.xlu1 %471 }
 0x170   :  { %v457_v44 = vpop.xlane.xlu0 %456 }
 0x171   :  { %v469_v43 = vpop.xlane.xlu1 %468 }
 0x174   :  { %v463_v36 = vpop.xlane.xlu0 %462 }
 0x175   :  { %v466_v45 = vpop.xlane.xlu1 %465 }
 0x178   :  { %v475_v41 = vpop.xlane.xlu0 %474 }
 0x179   :  { %v478_v46 = vpop.xlane.xlu1 %477 }
 0x17d   :  { %v4623_v47 = vpop.xlane.xlu1 %483 }
 0x17e   :  { %v481_v6 = vpop.xlane.xlu0 %480 }
 0x181   :  { %v496_v7 = vpop.xlane.xlu1 %495 }
 0x182   :  { %v493_v32 = vpop.xlane.xlu0 %492 }
 0x185   :  { %v490_v33 = vpop.xlane.xlu1 %489 }
 0x1c1   :  { %v608_v48 = vpop.f32.mrb[8].mxu0 }
 0x1c2   :  { %v867_v49 = vrot.slane %v608_v48, %v4525_v27  ;;  %v692_v50 = vpop.f32.mrb[8].mxu1  ;;  %v3807_v51 = vpop.f32.mrb[9].mxu0 }
 0x1c3   :  { %v871_v52 = vrot.slane %v692_v50, %v4525_v27  ;;  %v3818_v53 = vpop.f32.mrb[9].mxu1 }
 0x1c4   :  { %v881_v54 = vadd.f32 %v867_v49, %v460_v42  ;;  %v880_v55 = vadd.f32 %v867_v49, %v457_v44  ;;  %v883_v56 = vadd.f32 %v867_v49, %v466_v45  ;;  %v882_v57 = vadd.f32 %v867_v49, %v463_v36  ;;  %v487_v53 = vpop.xlane.xlu0 %486 }
 0x1c5   :  { %v885_v60 = vadd.f32 %v871_v52, %v472_v40  ;;  %v884_v61 = vadd.f32 %v871_v52, %v469_v43  ;;  %v887_v62 = vadd.f32 %v871_v52, %v478_v46  ;;  %v886_v63 = vadd.f32 %v871_v52, %v475_v41 }
 0x1c6   :  { %vm897_vm4 = vcmp.gt.f32.partialorder %v881_v54, 0.0  ;;  %v913_v0 = vmul.f32 0.2, %v881_v54  ;;  %vm896_vm5 = vcmp.gt.f32.partialorder %v880_v55, 0.0  ;;  %v912_v2 = vmul.f32 0.2, %v880_v55 }
 0x1c7   :  { %vm901_vm6 = vcmp.gt.f32.partialorder %v885_v60, 0.0  ;;  %v917_v4 = vmul.f32 0.2, %v885_v60  ;;  %vm900_vm7 = vcmp.gt.f32.partialorder %v884_v61, 0.0  ;;  %v916_v5 = vmul.f32 0.2, %v884_v61 }
 0x1c8   :  { %v929_v8 = vsel %vm897_vm4, %v881_v54, %v913_v0  ;;  %v928_v9 = vsel %vm896_vm5, %v880_v55, %v912_v2  ;;  %vm899_vm8 = vcmp.gt.f32.partialorder %v883_v56, 0.0  ;;  %v915_v10 = vmul.f32 0.2, %v883_v56  ;;  %v502_v54 = vpop.xlane.xlu1 %501 }
 0x1c9   :  { %v4638_v11 = vadd.f32 %v929_v8, %v4630_v58  ;;  %v4641_v13 = vadd.f32 %v928_v9, %v4635_v59  ;;  %v933_v14 = vsel %vm901_vm6, %v885_v60, %v917_v4  ;;  %v932_v15 = vsel %vm900_vm7, %v884_v61, %v916_v5 }
 0x1ca   :  { %v4644_v19 = vadd.f32 %v933_v14, %v4630_v58  ;;  %v4647_v20 = vadd.f32 %v932_v15, %v4635_v59  ;;  %vm898_vm9 = vcmp.gt.f32.partialorder %v882_v57, 0.0  ;;  %v931_v25 = vsel %vm899_vm8, %v883_v56, %v915_v10 }
 0x1cb   :  { %v963_v21 = vsel %vm454_vm2, %v4638_v11, -inf  ;;  %v960_v22 = vsel %vm454_vm2, %v4641_v13, -inf  ;;  %v914_v26 = vmul.f32 0.2, %v882_v57  ;;  %vm903_vm10 = vcmp.gt.f32.partialorder %v887_v62, 0.0 }
 0x1cc   :  { %964 = vmax.xlane.f32.xlu1 %v963_v21  ;;  %961 = vmax.xlane.f32.xlu0 %v960_v22  ;;  %v919_v29 = vmul.f32 0.2, %v887_v62  ;;  %vm902_vm11 = vcmp.gt.f32.partialorder %v886_v63, 0.0  ;;  %v918_v31 = vmul.f32 0.2, %v886_v63  ;;  %v975_v35 = vsel %vm454_vm2, %v4644_v19, -inf }
 0x1cd   :  { %v930_v30 = vsel %vm898_vm9, %v882_v57, %v914_v26  ;;  %v4666_v37 = vadd.f32 %v931_v25, %v4656_v23  ;;  %v972_v39 = vsel %vm454_vm2, %v4647_v20, -inf }
 0x1ce   :  { %v935_v38 = vsel %vm903_vm10, %v887_v62, %v919_v29  ;;  %v4671_v40 = vadd.f32 %v930_v30, %v4661_v28  ;;  %v934_v43 = vsel %vm902_vm11, %v886_v63, %v918_v31  ;;  %v499_v31 = vpop.xlane.xlu0 %498 }
 0x1cf   :  { %v4674_v42 = vadd.f32 %v935_v38, %v4656_v23  ;;  %v4677_v44 = vadd.f32 %v934_v43, %v4661_v28  ;;  %v969_v49 = vsel %vm454_vm2, %v4666_v37, -inf }
 0x1d0   :  { %976 = vmax.xlane.f32.xlu1 %v975_v35  ;;  %973 = vmax.xlane.f32.xlu0 %v972_v39  ;;  %v966_v50 = vsel %vm454_vm2, %v4671_v40, -inf }
 0x1d1   :  { %v776_v45 = vpop.f32.mrb[10].mxu0  ;;  %v981_v52 = vsel %vm454_vm2, %v4674_v42, -inf  ;;  %v978_v55 = vsel %vm454_vm2, %v4677_v44, -inf }
 0x1d2   :  { %v875_v36 = vrot.slane %v776_v45, %v4525_v27  ;;  %v860_v46 = vpop.f32.mrb[10].mxu1  ;;  %v3829_v41 = vpop.f32.mrb[11].mxu0 }
 0x1d3   :  { %v879_v48 = vrot.slane %v860_v46, %v4525_v27  ;;  %v3840_v51 = vpop.f32.mrb[11].mxu1 }
 0x1d4   :  { %970 = vmax.xlane.f32.xlu1 %v969_v49  ;;  %967 = vmax.xlane.f32.xlu0 %v966_v50  ;;  %v889_v56 = vadd.f32 %v875_v36, %v4623_v47  ;;  %v888_v57 = vadd.f32 %v875_v36, %v481_v6  ;;  %v891_v60 = vadd.f32 %v875_v36, %v490_v33 }
 0x1d5   :  { %v893_v61 = vadd.f32 %v879_v48, %v496_v7  ;;  %v892_v62 = vadd.f32 %v879_v48, %v493_v32  ;;  %v890_v63 = vadd.f32 %v875_v36, %v487_v53  ;;  %v895_v0 = vadd.f32 %v879_v48, %v502_v54 }
 0x1d6   :  { %vm905_vm12 = vcmp.gt.f32.partialorder %v889_v56, 0.0  ;;  %v921_v2 = vmul.f32 0.2, %v889_v56  ;;  %vm904_vm13 = vcmp.gt.f32.partialorder %v888_v57, 0.0  ;;  %v920_v4 = vmul.f32 0.2, %v888_v57 }
 0x1d7   :  { %vm909_vm14 = vcmp.gt.f32.partialorder %v893_v61, 0.0  ;;  %v925_v5 = vmul.f32 0.2, %v893_v61  ;;  %vm908_vm15 = vcmp.gt.f32.partialorder %v892_v62, 0.0  ;;  %v924_v8 = vmul.f32 0.2, %v892_v62 }
 0x1d8   :  { %982 = vmax.xlane.f32.xlu1 %v981_v52  ;;  %979 = vmax.xlane.f32.xlu0 %v978_v55  ;;  %v937_v9 = vsel %vm905_vm12, %v889_v56, %v921_v2  ;;  %v936_v10 = vsel %vm904_vm13, %v888_v57, %v920_v4  ;;  %vm907_vm4 = vcmp.gt.f32.partialorder %v891_v60, 0.0  ;;  %v923_v47 = vmul.f32 0.2, %v891_v60 }
 0x1d9   :  { %v4691_v6 = vadd.f32 %v937_v9, %v4630_v58  ;;  %v4694_v7 = vadd.f32 %v936_v10, %v4635_v59  ;;  %v941_v14 = vsel %vm909_vm14, %v893_v61, %v925_v5  ;;  %v940_v15 = vsel %vm908_vm15, %v892_v62, %v924_v8 }
 0x1da   :  { %v4697_v21 = vadd.f32 %v941_v14, %v4630_v58  ;;  %v4700_v22 = vadd.f32 %v940_v15, %v4635_v59  ;;  %vm906_vm5 = vcmp.gt.f32.partialorder %v890_v63, 0.0  ;;  %v939_v29 = vsel %vm907_vm4, %v891_v60, %v923_v47 }
 0x1db   :  { %v987_v25 = vsel %vm454_vm2, %v4691_v6, -inf  ;;  %v984_v26 = vsel %vm454_vm2, %v4694_v7, -inf  ;;  %v922_v30 = vmul.f32 0.2, %v890_v63  ;;  %v927_v32 = vmul.f32 0.2, %v895_v0 }
 0x1dc   :  { %988 = vmax.xlane.f32.xlu1 %v987_v25  ;;  %985 = vmax.xlane.f32.xlu0 %v984_v26  ;;  %vm911_vm6 = vcmp.gt.f32.partialorder %v895_v0, 0.0  ;;  %v894_v58 = vadd.f32 %v879_v48, %v499_v31  ;;  %v999_v59 = vsel %vm454_vm2, %v4697_v21, -inf  ;;  %v4709_v35 = vadd.f32 %v939_v29, %v4656_v23 }
 0x1dd   :  { %v938_v33 = vsel %vm906_vm5, %v890_v63, %v922_v30  ;;  %v996_v38 = vsel %vm454_vm2, %v4700_v22, -inf  ;;  %v943_v45 = vsel %vm911_vm6, %v895_v0, %v927_v32 }
 0x1de   :  { %v4714_v39 = vadd.f32 %v938_v33, %v4661_v28  ;;  %vm910_vm7 = vcmp.gt.f32.partialorder %v894_v58, 0.0  ;;  %v926_v43 = vmul.f32 0.2, %v894_v58  ;;  %v993_v46 = vsel %vm454_vm2, %v4709_v35, -inf }
 0x1df   :  { %v4721_v48 = vadd.f32 %v943_v45, %v4656_v23 }
 0x1e0   :  { %1000 = vmax.xlane.f32.xlu1 %v999_v59  ;;  %997 = vmax.xlane.f32.xlu0 %v996_v38  ;;  %v942_v36 = vsel %vm910_vm7, %v894_v58, %v926_v43  ;;  %v990_v41 = vsel %vm454_vm2, %v4714_v39, -inf }
 0x1e1   :  { %v4724_v49 = vadd.f32 %v942_v36, %v4661_v28  ;;  %v1005_v50 = vsel %vm454_vm2, %v4721_v48, -inf }
 0x1e3   :  { %v1002_v51 = vsel %vm454_vm2, %v4724_v49, -inf }
 0x1e4   :  { %994 = vmax.xlane.f32.xlu1 %v993_v46  ;;  %991 = vmax.xlane.f32.xlu0 %v990_v41 }
 0x1e8   :  { %1006 = vmax.xlane.f32.xlu1 %v1005_v50  ;;  %1003 = vmax.xlane.f32.xlu0 %v1002_v51 }
 0x259   :  { %v965_v52 = vpop.xlane.xlu1 %964  ;;  %v962_v53 = vpop.xlane.xlu0 %961 }
 0x25a   :  { %v1009_v54 = vsub.f32 %v4638_v11, %v965_v52  ;;  %v1008_v23 = vsub.f32 %v4641_v13, %v962_v53 }
 0x25c   :  { %v1026_v55 = vmul.f32 1.442695, %v1009_v54  ;;  %v1024_v56 = vmul.f32 1.442695, %v1008_v23 }
 0x25d   :  { %v977_v28 = vpop.xlane.xlu1 %976  ;;  %v974_v57 = vpop.xlane.xlu0 %973 }
 0x25e   :  { %4270 = vpow2.f32 %v1026_v55  ;;  %v1013_v60 = vsub.f32 %v4644_v19, %v977_v28  ;;  %v1012_v61 = vsub.f32 %v4647_v20, %v974_v57 }
 0x25f   :  { %4272 = vpow2.f32 %v1024_v56 }
 0x260   :  { %v1034_v62 = vmul.f32 1.442695, %v1013_v60  ;;  %v1032_v63 = vmul.f32 1.442695, %v1012_v61 }
 0x261   :  { %v971_v0 = vpop.xlane.xlu1 %970  ;;  %v968_v2 = vpop.xlane.xlu0 %967 }
 0x262   :  { %4274 = vpow2.f32 %v1034_v62  ;;  %v1011_v4 = vsub.f32 %v4666_v37, %v971_v0  ;;  %v1010_v11 = vsub.f32 %v4671_v40, %v968_v2 }
 0x263   :  { %4276 = vpow2.f32 %v1032_v63 }
 0x264   :  { %v1030_v13 = vmul.f32 1.442695, %v1011_v4  ;;  %v1028_v5 = vmul.f32 1.442695, %v1010_v11 }
 0x265   :  { %v983_v8 = vpop.xlane.xlu1 %982  ;;  %v980_v9 = vpop.xlane.xlu0 %979 }
 0x266   :  { %4278 = vpow2.f32 %v1030_v13  ;;  %v1015_v19 = vsub.f32 %v4674_v42, %v983_v8  ;;  %v1014_v20 = vsub.f32 %v4677_v44, %v980_v9 }
 0x267   :  { %4280 = vpow2.f32 %v1028_v5 }
 0x268   :  { %v4738_v10 = vpop.eup %4270  ;;  %v1038_v47 = vmul.f32 1.442695, %v1015_v19  ;;  %v1036_v14 = vmul.f32 1.442695, %v1014_v20 }
 0x269   :  { %v4740_v15 = vpop.eup %4272  ;;  %v989_v37 = vpop.xlane.xlu1 %988  ;;  %v1059_v40 = vsel %vm454_vm2, %v4738_v10, 0.0 }
 0x26a   :  { %v986_v25 = vpop.xlane.xlu0 %985  ;;  %4282 = vpow2.f32 %v1038_v47  ;;  %v1017_v26 = vsub.f32 %v4691_v6, %v989_v37  ;;  %1060 = vadd.xlane.f32.xlu1 %v1059_v40  ;;  %v1056_v42 = vsel %vm454_vm2, %v4740_v15, 0.0 }
 0x26b   :  { %v1016_v29 = vsub.f32 %v4694_v7, %v986_v25  ;;  %4284 = vpow2.f32 %v1036_v14  ;;  %1057 = vadd.xlane.f32.xlu0 %v1056_v42 }
 0x26c   :  { %v4748_v44 = vpop.eup %4274  ;;  %v1042_v30 = vmul.f32 1.442695, %v1017_v26 }
 0x26d   :  { %v1040_v31 = vmul.f32 1.442695, %v1016_v29  ;;  %v4750_v32 = vpop.eup %4276  ;;  %v1001_v33 = vpop.xlane.xlu1 %1000  ;;  %v1071_v59 = vsel %vm454_vm2, %v4748_v44, 0.0 }
 0x26e   :  { %v998_v58 = vpop.xlane.xlu0 %997  ;;  %4286 = vpow2.f32 %v1042_v30  ;;  %v1021_v6 = vsub.f32 %v4697_v21, %v1001_v33  ;;  %1072 = vadd.xlane.f32.xlu1 %v1071_v59  ;;  %v1068_v38 = vsel %vm454_vm2, %v4750_v32, 0.0 }
 0x26f   :  { %v1020_v7 = vsub.f32 %v4700_v22, %v998_v58  ;;  %4288 = vpow2.f32 %v1040_v31  ;;  %1069 = vadd.xlane.f32.xlu0 %v1068_v38 }
 0x270   :  { %v4758_v43 = vpop.eup %4278  ;;  %v1050_v45 = vmul.f32 1.442695, %v1021_v6 }
 0x271   :  { %v1048_v36 = vmul.f32 1.442695, %v1020_v7  ;;  %v4760_v46 = vpop.eup %4280  ;;  %v995_v41 = vpop.xlane.xlu1 %994  ;;  %v1065_v51 = vsel %vm454_vm2, %v4758_v43, 0.0 }
 0x272   :  { %v992_v50 = vpop.xlane.xlu0 %991  ;;  %4290 = vpow2.f32 %v1050_v45  ;;  %v1019_v21 = vsub.f32 %v4709_v35, %v995_v41  ;;  %1066 = vadd.xlane.f32.xlu1 %v1065_v51  ;;  %v1062_v52 = vsel %vm454_vm2, %v4760_v46, 0.0 }
 0x273   :  { %v1018_v22 = vsub.f32 %v4714_v39, %v992_v50  ;;  %4292 = vpow2.f32 %v1048_v36  ;;  %1063 = vadd.xlane.f32.xlu0 %v1062_v52 }
 0x274   :  { %v4768_v53 = vpop.eup %4282  ;;  %v1046_v54 = vmul.f32 1.442695, %v1019_v21 }
 0x275   :  { %v1044_v23 = vmul.f32 1.442695, %v1018_v22  ;;  %v4770_v55 = vpop.eup %4284  ;;  %v1007_v56 = vpop.xlane.xlu1 %1006  ;;  %v1077_v57 = vsel %vm454_vm2, %v4768_v53, 0.0 }
 0x276   :  { %v1004_v28 = vpop.xlane.xlu0 %1003  ;;  %4294 = vpow2.f32 %v1046_v54  ;;  %v1023_v35 = vsub.f32 %v4721_v48, %v1007_v56  ;;  %1078 = vadd.xlane.f32.xlu1 %v1077_v57  ;;  %v1074_v60 = vsel %vm454_vm2, %v4770_v55, 0.0 }
 0x277   :  { %v1022_v39 = vsub.f32 %v4724_v49, %v1004_v28  ;;  %4296 = vpow2.f32 %v1044_v23  ;;  %1075 = vadd.xlane.f32.xlu0 %v1074_v60 }
 0x278   :  { %v4778_v61 = vpop.eup %4286  ;;  %v1054_v62 = vmul.f32 1.442695, %v1023_v35 }
 0x279   :  { %v1052_v63 = vmul.f32 1.442695, %v1022_v39  ;;  %v4780_v0 = vpop.eup %4288  ;;  %v1083_v2 = vsel %vm454_vm2, %v4778_v61, 0.0 }
 0x27a   :  { %4298 = vpow2.f32 %v1054_v62  ;;  %1084 = vadd.xlane.f32.xlu1 %v1083_v2  ;;  %v1080_v48 = vsel %vm454_vm2, %v4780_v0, 0.0 }
 0x27b   :  { %4300 = vpow2.f32 %v1052_v63  ;;  %1081 = vadd.xlane.f32.xlu0 %v1080_v48 }
 0x27c   :  { %v4786_v49 = vpop.eup %4290 }
 0x27d   :  { %v4788_v4 = vpop.eup %4292  ;;  %v1095_v11 = vsel %vm454_vm2, %v4786_v49, 0.0 }
 0x27e   :  { %1096 = vadd.xlane.f32.xlu1 %v1095_v11  ;;  %v1092_v13 = vsel %vm454_vm2, %v4788_v4, 0.0  ;;  %v1593_v11 = vld [vmem:[%s5370_s4 + $0x8] sm:$0xff] }
 0x27f   :  { %1093 = vadd.xlane.f32.xlu0 %v1092_v13  ;;  %v1596_v13 = vld [vmem:[%s5370_s4 + $0x20] sm:$0xff] }
 0x280   :  { %v4794_v5 = vpop.eup %4294 }
 0x281   :  { %v4796_v8 = vpop.eup %4296  ;;  %v1089_v9 = vsel %vm454_vm2, %v4794_v5, 0.0 }
 0x282   :  { %1090 = vadd.xlane.f32.xlu1 %v1089_v9  ;;  %v1086_v19 = vsel %vm454_vm2, %v4796_v8, 0.0  ;;  %v1594_v9 = vld [vmem:[%s5370_s4 + $0x10] sm:$0xff] }
 0x283   :  { %1087 = vadd.xlane.f32.xlu0 %v1086_v19  ;;  %v1595_v19 = vld [vmem:[%s5370_s4 + $0x18] sm:$0xff] }
 0x284   :  { %v4802_v20 = vpop.eup %4298 }
 0x285   :  { %v4804_v47 = vpop.eup %4300  ;;  %v1101_v14 = vsel %vm454_vm2, %v4802_v20, 0.0 }
 0x286   :  { %1102 = vadd.xlane.f32.xlu1 %v1101_v14  ;;  %v1098_v37 = vsel %vm454_vm2, %v4804_v47, 0.0  ;;  %v1598_v14 = vld [vmem:[%s5370_s4 + $0x30] sm:$0xff] }
 0x287   :  { %1099 = vadd.xlane.f32.xlu0 %v1098_v37  ;;  %v1599_v37 = vld [vmem:[%s5370_s4 + $0x38] sm:$0xff] }
 0x2f7   :  { %v1061_v25 = vpop.xlane.xlu1 %1060 }
 0x2f8   :  { %4302 = vrcp.f32 %v1061_v25  ;;  %v1058_v40 = vpop.xlane.xlu0 %1057  ;;  %v4169_v25 = vpack.c.bf16 %v1599_v37, %v1598_v14 }
 0x2f9   :  { %4304 = vrcp.f32 %v1058_v40  ;;  %v1600_v40 = vld [vmem:[%s5370_s4 + $0x40] sm:$0xff] }
 0x2fb   :  { %v1073_v26 = vpop.xlane.xlu1 %1072 }
 0x2fc   :  { %4306 = vrcp.f32 %v1073_v26  ;;  %v1070_v29 = vpop.xlane.xlu0 %1069  ;;  %v1601_v26 = vld [vmem:[%s5370_s4 + $0x48] sm:$0xff] }
 0x2fd   :  { %4308 = vrcp.f32 %v1070_v29  ;;  %v1604_v29 = vld [vmem:[%s5370_s4 + $0x60] sm:$0xff] }
 0x2ff   :  { %v1067_v42 = vpop.xlane.xlu1 %1066 }
 0x300   :  { %4310 = vrcp.f32 %v1067_v42  ;;  %v1064_v30 = vpop.xlane.xlu0 %1063  ;;  %v4881_v42 = vpack.c.bf16 %v1601_v26, %v1600_v40 }
 0x301   :  { %4312 = vrcp.f32 %v1064_v30  ;;  %v1605_v30 = vld [vmem:[%s5370_s4 + $0x68] sm:$0xff] }
 0x302   :  { %v4303_v31 = vpop.eup %4302 }
 0x303   :  { %v4305_v33 = vpop.eup %4304  ;;  %v1107_v58 = vmul.f32 %v4303_v31, %v4738_v10  ;;  %v1079_v59 = vpop.xlane.xlu1 %1078  ;;  %v4886_v31 = vpack.c.bf16 %v1605_v30, %v1604_v29 }
 0x304   :  { %4314 = vrcp.f32 %v1079_v59  ;;  %v1076_v6 = vpop.xlane.xlu0 %1075  ;;  %v1105_v7 = vmul.f32 %v4305_v33, %v4740_v15 }
 0x305   :  { %4316 = vrcp.f32 %v1076_v6 }
 0x306   :  { %v4307_v38 = vpop.eup %4306  ;;  %3849 = vmatprep.mubr.msk.f32.mxu0 %vm454_vm2, %v1105_v7 }
 0x307   :  { %v4309_v45 = vpop.eup %4308  ;;  %v1115_v36 = vmul.f32 %v4307_v38, %v4748_v44  ;;  %3850 = vmatmul.mubr.msk.f32.vlgmr.msra.gmra.mrb[12].mxu0 %vm454_vm2, %v1107_v58  ;;  %v1085_v41 = vpop.xlane.xlu1 %1084 }
 0x308   :  { %4144 = vmatpush3.bf16.msra.mxu0 %v4562_v1  ;;  %4318 = vrcp.f32 %v1085_v41  ;;  %v1082_v50 = vpop.xlane.xlu0 %1081  ;;  %v1113_v10 = vmul.f32 %v4309_v45, %v4750_v32 }
 0x309   :  { %4146 = vmatprep.subr.bf16.mxu0 %v4577_v12  ;;  %4320 = vrcp.f32 %v1082_v50 }
 0x30a   :  { %v4311_v15 = vpop.eup %4310  ;;  %3863 = vmatprep.mubr.msk.f32.mxu1 %vm454_vm2, %v1113_v10 }
 0x30b   :  { %v4313_v51 = vpop.eup %4312  ;;  %3864 = vmatmul.mubr.msk.f32.vlgmr.msra.gmra.mrb[12].mxu1 %vm454_vm2, %v1115_v36  ;;  %v1097_v21 = vpop.xlane.xlu1 %1096  ;;  %v1111_v44 = vmul.f32 %v4311_v15, %v4758_v43 }
 0x30c   :  { %4148 = vmatpush3.bf16.msra.mxu0 %v4577_v12  ;;  %4152 = vmatpush3.bf16.msra.mxu1 %v4564_v3  ;;  %4322 = vrcp.f32 %v1097_v21  ;;  %v1094_v1 = vpop.xlane.xlu0 %1093  ;;  %v1109_v32 = vmul.f32 %v4313_v51, %v4760_v46 }
 0x30d   :  { %4154 = vmatprep.subr.bf16.mxu1 %v4580_v18  ;;  %4324 = vrcp.f32 %v1094_v1 }
 0x30e   :  { %v4315_v22 = vpop.eup %4314  ;;  %3852 = vmatprep.mubr.msk.f32.mxu0 %vm454_vm2, %v1109_v32 }
 0x30f   :  { %v4317_v52 = vpop.eup %4316  ;;  %3853 = vmatmul.mubr.msk.f32.gmra.mrb[14].mxu0 %vm454_vm2, %v1111_v44  ;;  %v1091_v54 = vpop.xlane.xlu1 %1090  ;;  %v1119_v43 = vmul.f32 %v4315_v22, %v4768_v53 }
 0x310   :  { %4156 = vmatpush3.bf16.msra.mxu1 %v4580_v18  ;;  %4326 = vrcp.f32 %v1091_v54  ;;  %v1088_v3 = vpop.xlane.xlu0 %1087  ;;  %v1117_v12 = vmul.f32 %v4317_v52, %v4770_v55 }
 0x311   :  { %4328 = vrcp.f32 %v1088_v3 }
 0x312   :  { %v4319_v46 = vpop.eup %4318  ;;  %3866 = vmatprep.mubr.msk.f32.mxu1 %vm454_vm2, %v1117_v12 }
 0x313   :  { %v4321_v23 = vpop.eup %4320  ;;  %v1123_v56 = vmul.f32 %v4319_v46, %v4778_v61  ;;  %3867 = vmatmul.mubr.msk.f32.gmra.mrb[14].mxu1 %vm454_vm2, %v1119_v43  ;;  %v1103_v28 = vpop.xlane.xlu1 %1102 }
 0x314   :  { %4330 = vrcp.f32 %v1103_v28  ;;  %v1100_v57 = vpop.xlane.xlu0 %1099  ;;  %v1121_v53 = vmul.f32 %v4321_v23, %v4780_v0 }
 0x315   :  { %4332 = vrcp.f32 %v1100_v57  ;;  %v3501_v57 = vld [vmem:[%s5368_s2 + $0x10] ss:$0 sm:$0xff] }
 0x316   :  { %v4323_v18 = vpop.eup %4322  ;;  %3877 = vmatprep.mubr.msk.f32.mxu0 %vm454_vm2, %v1121_v53 }
 0x317   :  { %v4325_v35 = vpop.eup %4324  ;;  %v1131_v55 = vmul.f32 %v4323_v18, %v4786_v49  ;;  %3878 = vmatmul.mubr.msk.f32.vlgmr.msra.gmra.mrb[16].mxu0 %vm454_vm2, %v1123_v56 }
 0x318   :  { %v1129_v39 = vmul.f32 %v4325_v35, %v4788_v4  ;;  %v1592_v4 = vld [vmem:[%s5370_s4] sm:$0xff] }
 0x31a   :  { %v4327_v60 = vpop.eup %4326  ;;  %3891 = vmatprep.mubr.msk.f32.mxu1 %vm454_vm2, %v1129_v39  ;;  %v3502_v39 = vld [vmem:[%s5368_s2 + $0x18] ss:$0 sm:$0xff] }
 0x31b   :  { %v4329_v61 = vpop.eup %4328  ;;  %3892 = vmatmul.mubr.msk.f32.vlgmr.msra.gmra.mrb[16].mxu1 %vm454_vm2, %v1131_v55  ;;  %v1127_v62 = vmul.f32 %v4327_v60, %v4794_v5  ;;  %v4157_v5 = vpack.c.bf16 %v1593_v11, %v1592_v4 }
 0x31c   :  { %v1125_v63 = vmul.f32 %v4329_v61, %v4796_v8  ;;  %v1597_v8 = vld [vmem:[%s5370_s4 + $0x28] sm:$0xff] }
 0x31d   :  { %4158 = vmatprep.subr.bf16.mxu0 %v4157_v5 }
 0x31e   :  { %v4331_v0 = vpop.eup %4330  ;;  %3880 = vmatprep.mubr.msk.f32.mxu0 %vm454_vm2, %v1125_v63  ;;  %4160 = vmatpush3.bf16.msra.mxu0 %v4157_v5 }
 0x31f   :  { %v4333_v2 = vpop.eup %4332  ;;  %3881 = vmatmul.mubr.msk.f32.gmra.mrb[18].mxu0 %vm454_vm2, %v1127_v62  ;;  %v1135_v48 = vmul.f32 %v4331_v0, %v4802_v20  ;;  %v4165_v20 = vpack.c.bf16 %v1597_v8, %v1596_v13 }
 0x320   :  { %v1133_v49 = vmul.f32 %v4333_v2, %v4804_v47  ;;  %v4161_v47 = vpack.c.bf16 %v1595_v19, %v1594_v9 }
 0x321   :  { %4166 = vmatprep.subr.bf16.mxu1 %v4165_v20 }
 0x322   :  { %3894 = vmatprep.mubr.msk.f32.mxu1 %vm454_vm2, %v1133_v49  ;;  %4168 = vmatpush3.bf16.msra.mxu1 %v4165_v20 }
 0x323   :  { %3895 = vmatmul.mubr.msk.f32.gmra.mrb[18].mxu1 %vm454_vm2, %v1135_v48  ;;  %4162 = vmatprep.subr.bf16.mxu0 %v4161_v47 }
 0x324   :  { %4170 = vmatprep.subr.bf16.mxu1 %v4169_v25  ;;  %4164 = vmatpush3.bf16.msra.mxu0 %v4161_v47 }
 0x325   :  { %4174 = vmatprep.subr.bf16.mxu0 %v4881_v42 }
 0x326   :  { %4172 = vmatpush3.bf16.msra.mxu1 %v4169_v25 }
 0x327   :  { %4182 = vmatprep.subr.bf16.mxu1 %v4886_v31 }
 0x3da   :  { %v3851_v33 = vpop.f32.mrb[12].mxu0 }
 0x3db   :  { %v1214_v58 = vpop.f32.mrb[13].mxu0  ;;  %v1531_v6 = vsel %vm454_vm2, %v3851_v33, 0.0 }
 0x3dc   :  { %v1524_v45 = vsel %vm454_vm2, %v1214_v58, 0.0 }
 0x3de   :  { %v3865_v59 = vpop.f32.mrb[12].mxu1 }
 0x3df   :  { %v1532_v7 = vsel %vm454_vm2, %v3865_v59, 0.0  ;;  %v1311_v38 = vpop.f32.mrb[13].mxu1 }
 0x3e0   :  { %v1533_v36 = vadd.f32 %v1532_v7, %v1531_v6  ;;  %v1525_v41 = vsel %vm454_vm2, %v1311_v38, 0.0 }
 0x3e1   :  { %v1526_v50 = vadd.f32 %v1525_v41, %v1524_v45  ;;  %v1602_v45 = vld [vmem:[%s5370_s4 + $0x50] sm:$0xff] }
 0x3e2   :  { %v3854_v10 = vpop.f32.mrb[14].mxu0 }
 0x3e3   :  { %v1224_v15 = vpop.f32.mrb[15].mxu0  ;;  %v1545_v21 = vsel %vm454_vm2, %v3854_v10, 0.0  ;;  %v1606_v10 = vld [vmem:[%s5370_s4 + $0x70] sm:$0xff] }
 0x3e4   :  { %v1538_v32 = vsel %vm454_vm2, %v1224_v15, 0.0  ;;  %v1607_v15 = vld [vmem:[%s5370_s4 + $0x78] sm:$0xff] }
 0x3e6   :  { %v3868_v51 = vpop.f32.mrb[14].mxu1 }
 0x3e7   :  { %v1546_v44 = vsel %vm454_vm2, %v3868_v51, 0.0  ;;  %v1321_v1 = vpop.f32.mrb[15].mxu1 }
 0x3e8   :  { %v1547_v22 = vadd.f32 %v1546_v44, %v1545_v21  ;;  %v1539_v52 = vsel %vm454_vm2, %v1321_v1, 0.0  ;;  %v4185_v1 = vpack.c.bf16 %v1607_v15, %v1606_v10 }
 0x3e9   :  { %v1540_v54 = vadd.f32 %v1539_v52, %v1538_v32 }
 0x3ea   :  { %v3879_v43 = vpop.f32.mrb[16].mxu0 }
 0x3eb   :  { %v1534_v3 = vsel %vm454_vm2, %v3879_v43, 0.0  ;;  %v1408_v12 = vpop.f32.mrb[17].mxu0 }
 0x3ec   :  { %v1535_v46 = vadd.f32 %v1534_v3, %v1533_v36  ;;  %v1527_v23 = vsel %vm454_vm2, %v1408_v12, 0.0 }
 0x3ed   :  { %v1528_v56 = vadd.f32 %v1527_v23, %v1526_v50  ;;  %v1603_v50 = vld [vmem:[%s5370_s4 + $0x58] sm:$0xff] }
 0x3ee   :  { %v3893_v28 = vpop.f32.mrb[16].mxu1  ;;  %v4177_v44 = vpack.c.bf16 %v1603_v50, %v1602_v45 }
 0x3ef   :  { %v1536_v53 = vsel %vm454_vm2, %v3893_v28, 0.0  ;;  %v1505_v18 = vpop.f32.mrb[17].mxu1 }
 0x3f0   :  { %v1537_v35 = vadd.f32 %v1536_v53, %v1535_v46  ;;  %v1529_v55 = vsel %vm454_vm2, %v1505_v18, 0.0 }
 0x3f1   :  { %v1530_v60 = vadd.f32 %v1529_v55, %v1528_v56 }
 0x3f2   :  { %v1557_v61 = vmul.f32 %v3501_v57, %v1537_v35  ;;  %v3882_v62 = vpop.f32.mrb[18].mxu0 }
 0x3f3   :  { %v1556_v63 = vmul.f32 %v3501_v57, %v1530_v60  ;;  %v1548_v0 = vsel %vm454_vm2, %v3882_v62, 0.0  ;;  %v1418_v2 = vpop.f32.mrb[19].mxu0 }
 0x3f4   :  { %v1565_v48 = vadd.f32 %v3502_v39, %v1557_v61  ;;  %v1549_v49 = vadd.f32 %v1548_v0, %v1547_v22  ;;  %v1541_v4 = vsel %vm454_vm2, %v1418_v2, 0.0 }
 0x3f5   :  { %v1564_v11 = vadd.f32 %v3502_v39, %v1556_v63  ;;  %v1542_v13 = vadd.f32 %v1541_v4, %v1540_v54 }
 0x3f6   :  { %v1573_v5 = vmin.f32 %v1565_v48, 0.0  ;;  %v3896_v8 = vpop.f32.mrb[18].mxu1  ;;  %vm1569_vm9 = vcmp.gt.f32.partialorder %v1565_v48, 0.0 }
 0x3f7   :  { %v1572_v9 = vmin.f32 %v1564_v11, 0.0  ;;  %v1550_v19 = vsel %vm454_vm2, %v3896_v8, 0.0  ;;  %v1515_v20 = vpop.f32.mrb[19].mxu1  ;;  %vm1568_vm8 = vcmp.gt.f32.partialorder %v1564_v11, 0.0 }
 0x3f8   :  { %v1578_v47 = vmul.f32 1.442695, %v1573_v5  ;;  %v1551_v14 = vadd.f32 %v1550_v19, %v1549_v49  ;;  %v1543_v37 = vsel %vm454_vm2, %v1515_v20, 0.0 }
 0x3f9   :  { %v1576_v25 = vmul.f32 1.442695, %v1572_v9  ;;  %v1544_v40 = vadd.f32 %v1543_v37, %v1542_v13  ;;  %v3524_v19 = vld.sshfl [vmem:[%s5368_s2 + $0x28] sm:$0x33 pattern:$0x75316420] }
 0x3fa   :  { %4334 = vpow2.f32 %v1578_v47  ;;  %v1559_v26 = vmul.f32 %v3501_v57, %v1551_v14  ;;  %v2088_v10 = vrot.slane %v3524_v19, %v4522_v24 }
 0x3fb   :  { %v1558_v29 = vmul.f32 %v3501_v57, %v1544_v40  ;;  %4336 = vpow2.f32 %v1576_v25 }
 0x3fc   :  { %v1567_v30 = vadd.f32 %v3502_v39, %v1559_v26 }
 0x3fd   :  { %v1566_v33 = vadd.f32 %v3502_v39, %v1558_v29 }
 0x3fe   :  { %v1575_v58 = vmin.f32 %v1567_v30, 0.0  ;;  %vm1571_vm11 = vcmp.gt.f32.partialorder %v1567_v30, 0.0 }
 0x3ff   :  { %v1574_v59 = vmin.f32 %v1566_v33, 0.0  ;;  %vm1570_vm10 = vcmp.gt.f32.partialorder %v1566_v33, 0.0 }
 0x400   :  { %v1582_v6 = vmul.f32 1.442695, %v1575_v58 }
 0x401   :  { %v1580_v7 = vmul.f32 1.442695, %v1574_v59  ;;  %v2081_v59 = vcombine.high %v3524_v19, %v3524_v19 }
 0x402   :  { %4338 = vpow2.f32 %v1582_v6 }
 0x403   :  { %4340 = vpow2.f32 %v1580_v7 }
 0x404   :  { %v4335_v38 = vpop.eup %4334 }
 0x405   :  { %v4337_v36 = vpop.eup %4336  ;;  %v3504_v41 = vadd.f32 -1.0, %v4335_v38 }
 0x406   :  { %v3503_v51 = vadd.f32 -1.0, %v4337_v36 }
 0x407   :  { %v1589_v32 = vsel %vm1569_vm9, %v1565_v48, %v3504_v41 }
 0x408   :  { %v1588_v21 = vsel %vm1568_vm8, %v1564_v11, %v3503_v51 }
 0x409   :  { %3905 = vmatprep.mubr.msk.f32.mxu0 %vm454_vm2, %v1588_v21  ;;  %3919 = vmatprep.mubr.msk.f32.mxu1 %vm454_vm2, %v1588_v21 }
 0x40a   :  { %3906 = vmatmul.mubr.msk.f32.vlgmr.msra.gmra.mrb[20].mxu0 %vm454_vm2, %v1589_v32  ;;  %3920 = vmatmul.mubr.msk.f32.vlgmr.msra.gmra.mrb[20].mxu1 %vm454_vm2, %v1589_v32 }
 0x40b   :  { %4176 = vmatpush3.bf16.msra.mxu0 %v4881_v42  ;;  %4184 = vmatpush3.bf16.msra.mxu1 %v4886_v31  ;;  %v3523_v31 = vld.sshfl [vmem:[%s5368_s2 + $0x20] sm:$0x33 pattern:$0x75316420] }
 0x40c   :  { %v4339_v22 = vpop.eup %4338  ;;  %4178 = vmatprep.subr.bf16.mxu0 %v4177_v44  ;;  %4186 = vmatprep.subr.bf16.mxu1 %v4185_v1  ;;  %v1972_v12 = vcombine.high %v3523_v31, %v3523_v31  ;;  %v1979_v46 = vrot.slane %v3523_v31, %v4522_v24 }
 0x40d   :  { %v4341_v52 = vpop.eup %4340  ;;  %v3506_v54 = vadd.f32 -1.0, %v4339_v22 }
 0x40e   :  { %v3505_v43 = vadd.f32 -1.0, %v4341_v52  ;;  %v1986_v23 = vrot.slane %v1972_v12, %v4522_v24  ;;  %v1992_v56 = vrot.slane %v1979_v46, %v4525_v27  ;;  %v1987_v49 = vcombine.high %v1979_v46, %v1979_v46 }
 0x40f   :  { %4180 = vmatpush3.bf16.msra.mxu0 %v4177_v44  ;;  %4188 = vmatpush3.bf16.msra.mxu1 %v4185_v1  ;;  %v1591_v42 = vsel %vm1571_vm11, %v1567_v30, %v3506_v54  ;;  %v2095_v44 = vrot.slane %v2081_v59, %v4522_v24 }
 0x410   :  { %v1590_v3 = vsel %vm1570_vm10, %v1566_v33, %v3505_v43  ;;  %4189 = vmatprep.subr.bf16.mxu0 %v4426_v16  ;;  %4197 = vmatprep.subr.bf16.mxu1 %v4426_v16  ;;  %v1996_v28 = vrot.slane %v1986_v23, %v4525_v27  ;;  %v1988_v25 = vcombine.high %v1986_v23, %v1986_v23 }
 0x411   :  { %3908 = vmatprep.mubr.msk.f32.mxu0 %vm454_vm2, %v1590_v3  ;;  %3922 = vmatprep.mubr.msk.f32.mxu1 %vm454_vm2, %v1590_v3  ;;  %v2000_v26 = vrot.slane %v1987_v49, %v4525_v27 }
 0x412   :  { %3909 = vmatmul.mubr.msk.f32.gmra.mrb[22].mxu0 %vm454_vm2, %v1591_v42  ;;  %3923 = vmatmul.mubr.msk.f32.gmra.mrb[22].mxu1 %vm454_vm2, %v1591_v42  ;;  %v2004_v36 = vrot.slane %v1988_v25, %v4525_v27 }
 0x413   :  { %3933 = vmatprep.mubr.msk.f32.mxu0 %vm454_vm2, %v1588_v21  ;;  %3947 = vmatprep.mubr.msk.f32.mxu1 %vm454_vm2, %v1588_v21 }
 0x416   :  { %3934 = vmatmul.mubr.msk.f32.vlgmr.msra.gmra.mrb[24].mxu0 %vm454_vm2, %v1589_v32  ;;  %3948 = vmatmul.mubr.msk.f32.vlgmr.msra.gmra.mrb[24].mxu1 %vm454_vm2, %v1589_v32 }
 0x417   :  { %3936 = vmatprep.mubr.msk.f32.mxu0 %vm454_vm2, %v1590_v3  ;;  %3950 = vmatprep.mubr.msk.f32.mxu1 %vm454_vm2, %v1590_v3 }
 0x41a   :  { %3937 = vmatmul.mubr.msk.f32.gmra.mrb[26].mxu0 %vm454_vm2, %v1591_v42  ;;  %3951 = vmatmul.mubr.msk.f32.gmra.mrb[26].mxu1 %vm454_vm2, %v1591_v42 }
 0x41b   :  { %3961 = vmatprep.mubr.msk.f32.mxu0 %vm4427_vm1, %v4428_v17  ;;  %3972 = vmatprep.mubr.msk.f32.mxu1 %vm4427_vm1, %v4428_v17 }
 0x4dd   :  { %v3907_v57 = vpop.f32.mrb[20].mxu0  ;;  %v3921_v53 = vpop.f32.mrb[20].mxu1 }
 0x4de   :  { %v2010_v18 = vmul.f32 %v3907_v57, %v1992_v56  ;;  %v1690_v35 = vpop.f32.mrb[21].mxu0  ;;  %v1775_v55 = vpop.f32.mrb[21].mxu1  ;;  %v2014_v62 = vmul.f32 %v3921_v53, %v1996_v28 }
 0x4df   :  { %v2009_v39 = vmul.f32 %v1992_v56, %v1690_v35  ;;  %v4955_v60 = vpack.c.bf16 %v3907_v57, %v1690_v35  ;;  %v4957_v61 = vpack.c.bf16 %v3921_v53, %v1775_v55  ;;  %v2013_v0 = vmul.f32 %v1996_v28, %v1775_v55 }
 0x4e0   :  { %v2028_v63 = vsel %vm454_vm2, %v2010_v18, 0.0  ;;  %v2040_v48 = vsel %vm454_vm2, %v2014_v62, 0.0  ;;  %v2096_v53 = vcombine.high %v2088_v10, %v2088_v10  ;;  %v2097_v18 = vcombine.high %v2095_v44, %v2095_v44 }
 0x4e1   :  { %2029 = vadd.xlane.f32.xlu1 %v2028_v63  ;;  %4192 = vmatpush3.bf16.xpose.msk.msra.mxu0 %vm4532_vm3, %v4955_v60  ;;  %v2025_v2 = vsel %vm454_vm2, %v2009_v39, 0.0  ;;  %v2037_v13 = vsel %vm454_vm2, %v2013_v0, 0.0 }
 0x4e2   :  { %4200 = vmatpush3.bf16.xpose.msk.msra.mxu1 %vm4532_vm3, %v4957_v61  ;;  %2026 = vadd.xlane.f32.xlu0 %v2025_v2 }
 0x4e3   :  { %4193 = vmatprep.subr.bf16.mxu0 %v4426_v16  ;;  %4201 = vmatprep.subr.bf16.mxu1 %v4426_v16 }
 0x4e5   :  { %2041 = vadd.xlane.f32.xlu1 %v2040_v48  ;;  %v3910_v4 = vpop.f32.mrb[22].mxu0  ;;  %v3924_v11 = vpop.f32.mrb[22].mxu1 }
 0x4e6   :  { %v2012_v5 = vmul.f32 %v3910_v4, %v1992_v56  ;;  %2038 = vadd.xlane.f32.xlu0 %v2037_v13  ;;  %v1700_v8 = vpop.f32.mrb[23].mxu0  ;;  %v1785_v9 = vpop.f32.mrb[23].mxu1  ;;  %v2016_v37 = vmul.f32 %v3924_v11, %v1996_v28 }
 0x4e7   :  { %v2011_v20 = vmul.f32 %v1992_v56, %v1700_v8  ;;  %v4974_v47 = vpack.c.bf16 %v3910_v4, %v1700_v8  ;;  %v4976_v14 = vpack.c.bf16 %v3924_v11, %v1785_v9  ;;  %v2015_v29 = vmul.f32 %v1996_v28, %v1785_v9 }
 0x4e8   :  { %v2034_v40 = vsel %vm454_vm2, %v2012_v5, 0.0  ;;  %v2046_v50 = vsel %vm454_vm2, %v2016_v37, 0.0 }
 0x4e9   :  { %v3949_v30 = vpop.f32.mrb[24].mxu1  ;;  %2035 = vadd.xlane.f32.xlu1 %v2034_v40  ;;  %v3935_v33 = vpop.f32.mrb[24].mxu0  ;;  %4196 = vmatpush3.bf16.xpose.msk.msra.mxu0 %vm4532_vm3, %v4974_v47  ;;  %v2031_v58 = vsel %vm454_vm2, %v2011_v20, 0.0  ;;  %v2043_v21 = vsel %vm454_vm2, %v2015_v29, 0.0 }
 0x4ea   :  { %4204 = vmatpush3.bf16.xpose.msk.msra.mxu1 %vm4532_vm3, %v4976_v14  ;;  %v1945_v6 = vpop.f32.mrb[25].mxu1  ;;  %2032 = vadd.xlane.f32.xlu0 %v2031_v58  ;;  %v1860_v7 = vpop.f32.mrb[25].mxu0  ;;  %v2018_v41 = vmul.f32 %v3935_v33, %v2000_v26  ;;  %v2022_v43 = vmul.f32 %v3949_v30, %v2004_v36 }
 0x4eb   :  { %v4987_v38 = vpack.c.bf16 %v3949_v30, %v1945_v6  ;;  %v4989_v45 = vpack.c.bf16 %v3935_v33, %v1860_v7  ;;  %4205 = vmatprep.subr.bf16.mxu0 %v4426_v16  ;;  %4213 = vmatprep.subr.bf16.mxu1 %v4426_v16  ;;  %v2017_v1 = vmul.f32 %v2000_v26, %v1860_v7 }
 0x4ec   :  { %v2052_v3 = vsel %vm454_vm2, %v2018_v41, 0.0  ;;  %v2021_v42 = vmul.f32 %v2004_v36, %v1945_v6  ;;  %v2064_v12 = vsel %vm454_vm2, %v2022_v43, 0.0  ;;  %v5051_v41 = vld [vmem:[%s5369_s1 + $0x8] sm:$0xff] }
 0x4ed   :  { %v3952_v15 = vpop.f32.mrb[26].mxu1  ;;  %2047 = vadd.xlane.f32.xlu1 %v2046_v50  ;;  %v3938_v51 = vpop.f32.mrb[26].mxu0  ;;  %v2049_v24 = vsel %vm454_vm2, %v2017_v1, 0.0 }
 0x4ee   :  { %v1955_v32 = vpop.f32.mrb[27].mxu1  ;;  %2044 = vadd.xlane.f32.xlu0 %v2043_v21  ;;  %v1870_v22 = vpop.f32.mrb[27].mxu0  ;;  %v2020_v31 = vmul.f32 %v3938_v51, %v2000_v26  ;;  %v2061_v46 = vsel %vm454_vm2, %v2021_v42, 0.0  ;;  %v2024_v56 = vmul.f32 %v3952_v15, %v2004_v36 }
 0x4ef   :  { %v4998_v52 = vpack.c.bf16 %v3952_v15, %v1955_v32  ;;  %v5000_v54 = vpack.c.bf16 %v3938_v51, %v1870_v22  ;;  %v2019_v23 = vmul.f32 %v2000_v26, %v1870_v22 }
 0x4f0   :  { %3962 = vmatmul.mubr.msk.f32.vlgmr.msra.gmra.mrb[28].mxu0 %vm454_vm2, %v2088_v10  ;;  %v2058_v28 = vsel %vm454_vm2, %v2020_v31, 0.0  ;;  %v2070_v57 = vsel %vm454_vm2, %v2024_v56, 0.0  ;;  %v5059_v10 = vld [vmem:[%s5369_s1] sm:$0xff] }
 0x4f1   :  { %3973 = vmatmul.mubr.msk.f32.vlgmr.msra.gmra.mrb[28].mxu1 %vm454_vm2, %v2095_v44  ;;  %2053 = vadd.xlane.f32.xlu1 %v2052_v3 }
 0x4f2   :  { %4216 = vmatpush3.bf16.xpose.msk.msra.mxu1 %vm4532_vm3, %v4987_v38  ;;  %4208 = vmatpush3.bf16.xpose.msk.msra.mxu0 %vm4532_vm3, %v4989_v45 }
 0x4f3   :  { %2050 = vadd.xlane.f32.xlu0 %v2049_v24  ;;  %4209 = vmatprep.subr.bf16.mxu0 %v4426_v16 }
 0x4f4   :  { %4217 = vmatprep.subr.bf16.mxu1 %v4426_v16  ;;  %3983 = vmatprep.mubr.msk.f32.mxu0 %vm4427_vm1, %v4428_v17  ;;  %v2023_v16 = vmul.f32 %v2004_v36, %v1955_v32 }
 0x4f5   :  { %2065 = vadd.xlane.f32.xlu1 %v2064_v12  ;;  %3994 = vmatprep.mubr.msk.f32.mxu1 %vm4427_vm1, %v4428_v17  ;;  %v2055_v17 = vsel %vm454_vm2, %v2019_v23, 0.0  ;;  %v5077_v12 = vld [vmem:[%s5369_s1 + $0x18] sm:$0xff] }
 0x4f6   :  { %v2067_v35 = vsel %vm454_vm2, %v2023_v16, 0.0 }
 0x4f7   :  { %2062 = vadd.xlane.f32.xlu0 %v2061_v46 }
 0x4f9   :  { %2059 = vadd.xlane.f32.xlu1 %v2058_v28 }
 0x4fa   :  { %4220 = vmatpush3.bf16.xpose.msk.msra.mxu1 %vm4532_vm3, %v4998_v52  ;;  %4212 = vmatpush3.bf16.xpose.msk.msra.mxu0 %vm4532_vm3, %v5000_v54 }
 0x4fb   :  { %4222 = vmatprep.subr.bf16.mxu0 %v4955_v60  ;;  %4230 = vmatprep.subr.bf16.mxu1 %v4957_v61 }
 0x4fc   :  { %2056 = vadd.xlane.f32.xlu0 %v2055_v17 }
 0x4fd   :  { %2071 = vadd.xlane.f32.xlu1 %v2070_v57  ;;  %v5089_v57 = vld [vmem:[%s5369_s1 + $0x10] sm:$0xff] }
 0x500   :  { %2068 = vadd.xlane.f32.xlu0 %v2067_v35 }
 0x501   :  { %3984 = vmatmul.mubr.msk.f32.vlgmr.msra.gmra.mrb[30].mxu0 %vm454_vm2, %v2096_v53  ;;  %3995 = vmatmul.mubr.msk.f32.vlgmr.msra.gmra.mrb[30].mxu1 %vm454_vm2, %v2097_v18 }
 0x502   :  { %4224 = vmatpush3.bf16.msra.mxu0 %v4955_v60  ;;  %4232 = vmatpush3.bf16.msra.mxu1 %v4957_v61 }
 0x503   :  { %4226 = vmatprep.subr.bf16.mxu0 %v4974_v47  ;;  %4234 = vmatprep.subr.bf16.mxu1 %v4976_v14 }
 0x506   :  { %4228 = vmatpush3.bf16.msra.mxu0 %v4974_v47  ;;  %4236 = vmatpush3.bf16.msra.mxu1 %v4976_v14 }
 0x507   :  { %4238 = vmatprep.subr.bf16.mxu0 %v4989_v45  ;;  %4246 = vmatprep.subr.bf16.mxu1 %v4987_v38 }
 0x56e   :  { %v2030_v34 = vpop.xlane.xlu1 %2029 }
 0x56f   :  { %v2027_v55 = vpop.xlane.xlu0 %2026 }
 0x572   :  { %v2042_v39 = vpop.xlane.xlu1 %2041 }
 0x573   :  { %v2039_v62 = vpop.xlane.xlu0 %2038 }
 0x576   :  { %v2036_v63 = vpop.xlane.xlu1 %2035 }
 0x577   :  { %v2033_v60 = vpop.xlane.xlu0 %2032 }
 0x57a   :  { %v2048_v0 = vpop.xlane.xlu1 %2047 }
 0x57b   :  { %v2045_v61 = vpop.xlane.xlu0 %2044 }
 0x57e   :  { %v5042_v2 = vpop.xlane.xlu1 %2053 }
 0x580   :  { %v5045_v13 = vpop.xlane.xlu0 %2050 }
 0x582   :  { %v2066_v7 = vpop.xlane.xlu1 %2065 }
 0x584   :  { %v2063_v36 = vpop.xlane.xlu0 %2062 }
 0x586   :  { %v2060_v56 = vpop.xlane.xlu1 %2059 }
 0x589   :  { %v2057_v28 = vpop.xlane.xlu0 %2056 }
 0x5c3   :  { %v2178_v48 = vpop.f32.mrb[28].mxu0 }
 0x5c4   :  { %v2437_v49 = vrot.slane %v2178_v48, %v4525_v27  ;;  %v2262_v4 = vpop.f32.mrb[28].mxu1  ;;  %v3963_v11 = vpop.f32.mrb[29].mxu0 }
 0x5c5   :  { %v2441_v5 = vrot.slane %v2262_v4, %v4525_v27  ;;  %v3974_v8 = vpop.f32.mrb[29].mxu1  ;;  %v2072_v11 = vpop.xlane.xlu1 %2071 }
 0x5c6   :  { %v2451_v9 = vadd.f32 %v2437_v49, %v2030_v34  ;;  %v2450_v19 = vadd.f32 %v2437_v49, %v2027_v55  ;;  %v2453_v20 = vadd.f32 %v2437_v49, %v2036_v63  ;;  %v2452_v47 = vadd.f32 %v2437_v49, %v2033_v60 }
 0x5c7   :  { %v2455_v14 = vadd.f32 %v2441_v5, %v2042_v39  ;;  %v2454_v37 = vadd.f32 %v2441_v5, %v2039_v62  ;;  %v2457_v25 = vadd.f32 %v2441_v5, %v2048_v0  ;;  %v2456_v40 = vadd.f32 %v2441_v5, %v2045_v61  ;;  %v2069_v5 = vpop.xlane.xlu0 %2068 }
 0x5c8   :  { %vm2467_vm1 = vcmp.gt.f32.partialorder %v2451_v9, 0.0  ;;  %v2483_v26 = vmul.f32 0.2, %v2451_v9  ;;  %vm2466_vm3 = vcmp.gt.f32.partialorder %v2450_v19, 0.0  ;;  %v2482_v29 = vmul.f32 0.2, %v2450_v19 }
 0x5c9   :  { %vm2471_vm12 = vcmp.gt.f32.partialorder %v2455_v14, 0.0  ;;  %v2487_v30 = vmul.f32 0.2, %v2455_v14  ;;  %vm2470_vm13 = vcmp.gt.f32.partialorder %v2454_v37, 0.0  ;;  %v2486_v33 = vmul.f32 0.2, %v2454_v37 }
 0x5ca   :  { %v2499_v58 = vsel %vm2467_vm1, %v2451_v9, %v2483_v26  ;;  %v2498_v59 = vsel %vm2466_vm3, %v2450_v19, %v2482_v29  ;;  %vm2469_vm14 = vcmp.gt.f32.partialorder %v2453_v20, 0.0  ;;  %v2485_v6 = vmul.f32 0.2, %v2453_v20 }
 0x5cb   :  { %v5054_v50 = vadd.f32 %v5051_v41, %v2499_v58  ;;  %v5062_v15 = vadd.f32 %v5059_v10, %v2498_v59  ;;  %v2503_v51 = vsel %vm2471_vm12, %v2455_v14, %v2487_v30  ;;  %v2502_v21 = vsel %vm2470_vm13, %v2454_v37, %v2486_v33 }
 0x5cc   :  { %v5065_v44 = vadd.f32 %v5051_v41, %v2503_v51  ;;  %v5068_v1 = vadd.f32 %v5059_v10, %v2502_v21  ;;  %vm2468_vm15 = vcmp.gt.f32.partialorder %v2452_v47, 0.0  ;;  %v2501_v43 = vsel %vm2469_vm14, %v2453_v20, %v2485_v6 }
 0x5cd   :  { %v2533_v32 = vsel %vm454_vm2, %v5054_v50, -inf  ;;  %v2530_v22 = vsel %vm454_vm2, %v5062_v15, -inf  ;;  %v2484_v3 = vmul.f32 0.2, %v2452_v47  ;;  %vm2473_vm4 = vcmp.gt.f32.partialorder %v2457_v25, 0.0 }
 0x5ce   :  { %2534 = vmax.xlane.f32.xlu1 %v2533_v32  ;;  %2531 = vmax.xlane.f32.xlu0 %v2530_v22  ;;  %v2489_v42 = vmul.f32 0.2, %v2457_v25  ;;  %vm2472_vm5 = vcmp.gt.f32.partialorder %v2456_v40, 0.0  ;;  %v2488_v31 = vmul.f32 0.2, %v2456_v40  ;;  %v5080_v46 = vadd.f32 %v5077_v12, %v2501_v43 }
 0x5cf   :  { %v2500_v24 = vsel %vm2468_vm15, %v2452_v47, %v2484_v3  ;;  %v2545_v16 = vsel %vm454_vm2, %v5065_v44, -inf  ;;  %v2542_v17 = vsel %vm454_vm2, %v5068_v1, -inf }
 0x5d0   :  { %v2505_v23 = vsel %vm2473_vm4, %v2457_v25, %v2489_v42  ;;  %v5092_v53 = vadd.f32 %v5089_v57, %v2500_v24  ;;  %v2504_v18 = vsel %vm2472_vm5, %v2456_v40, %v2488_v31  ;;  %v2539_v0 = vsel %vm454_vm2, %v5080_v46, -inf }
 0x5d1   :  { %v5095_v35 = vadd.f32 %v5077_v12, %v2505_v23  ;;  %v5098_v34 = vadd.f32 %v5089_v57, %v2504_v18 }
 0x5d2   :  { %2546 = vmax.xlane.f32.xlu1 %v2545_v16  ;;  %2543 = vmax.xlane.f32.xlu0 %v2542_v17  ;;  %v2536_v61 = vsel %vm454_vm2, %v5092_v53, -inf }
 0x5d3   :  { %v2551_v49 = vsel %vm454_vm2, %v5095_v35, -inf  ;;  %v2548_v4 = vsel %vm454_vm2, %v5098_v34, -inf }
 0x5d4   :  { %v2346_v55 = vpop.f32.mrb[30].mxu0  ;;  %v2430_v39 = vpop.f32.mrb[30].mxu1 }
 0x5d5   :  { %v2445_v62 = vrot.slane %v2346_v55, %v4525_v27  ;;  %v2449_v63 = vrot.slane %v2430_v39, %v4525_v27  ;;  %v3985_v60 = vpop.f32.mrb[31].mxu0  ;;  %v3996_v48 = vpop.f32.mrb[31].mxu1 }
 0x5d6   :  { %2540 = vmax.xlane.f32.xlu1 %v2539_v0  ;;  %2537 = vmax.xlane.f32.xlu0 %v2536_v61 }
 0x5d7   :  { %v2459_v27 = vadd.f32 %v2445_v62, %v5042_v2  ;;  %v2458_v8 = vadd.f32 %v2445_v62, %v5045_v13  ;;  %v2463_v9 = vadd.f32 %v2449_v63, %v2066_v7  ;;  %v2462_v19 = vadd.f32 %v2449_v63, %v2063_v36 }
 0x5d8   :  { %v2461_v20 = vadd.f32 %v2445_v62, %v2060_v56  ;;  %v2460_v47 = vadd.f32 %v2445_v62, %v2057_v28  ;;  %v2465_v14 = vadd.f32 %v2449_v63, %v2072_v11  ;;  %v2464_v37 = vadd.f32 %v2449_v63, %v2069_v5 }
 0x5d9   :  { %vm2475_vm6 = vcmp.gt.f32.partialorder %v2459_v27, 0.0  ;;  %v2491_v25 = vmul.f32 0.2, %v2459_v27  ;;  %vm2474_vm7 = vcmp.gt.f32.partialorder %v2458_v8, 0.0  ;;  %v2490_v40 = vmul.f32 0.2, %v2458_v8 }
 0x5da   :  { %2552 = vmax.xlane.f32.xlu1 %v2551_v49  ;;  %2549 = vmax.xlane.f32.xlu0 %v2548_v4  ;;  %vm2479_vm8 = vcmp.gt.f32.partialorder %v2463_v9, 0.0  ;;  %v2495_v26 = vmul.f32 0.2, %v2463_v9  ;;  %vm2478_vm9 = vcmp.gt.f32.partialorder %v2462_v19, 0.0  ;;  %v2494_v29 = vmul.f32 0.2, %v2462_v19 }
 0x5db   :  { %v2507_v30 = vsel %vm2475_vm6, %v2459_v27, %v2491_v25  ;;  %v2506_v2 = vsel %vm2474_vm7, %v2458_v8, %v2490_v40  ;;  %vm2477_vm10 = vcmp.gt.f32.partialorder %v2461_v20, 0.0  ;;  %v2493_v13 = vmul.f32 0.2, %v2461_v20 }
 0x5dc   :  { %v5113_v33 = vadd.f32 %v5051_v41, %v2507_v30  ;;  %v5116_v58 = vadd.f32 %v5059_v10, %v2506_v2  ;;  %v2511_v59 = vsel %vm2479_vm8, %v2463_v9, %v2495_v26  ;;  %v2510_v6 = vsel %vm2478_vm9, %v2462_v19, %v2494_v29 }
 0x5dd   :  { %v5119_v7 = vadd.f32 %v5051_v41, %v2511_v59  ;;  %vm2476_vm11 = vcmp.gt.f32.partialorder %v2460_v47, 0.0  ;;  %v5126_v21 = vadd.f32 %v5059_v10, %v2510_v6  ;;  %v2492_v32 = vmul.f32 0.2, %v2460_v47 }
 0x5de   :  { %v2557_v36 = vsel %vm454_vm2, %v5113_v33, -inf  ;;  %v2554_v51 = vsel %vm454_vm2, %v5116_v58, -inf  ;;  %v2509_v22 = vsel %vm2477_vm10, %v2461_v20, %v2493_v13  ;;  %v2497_v43 = vmul.f32 0.2, %v2465_v14 }
 0x5df   :  { %2558 = vmax.xlane.f32.xlu1 %v2557_v36  ;;  %2555 = vmax.xlane.f32.xlu0 %v2554_v51  ;;  %v2508_v3 = vsel %vm2476_vm11, %v2460_v47, %v2492_v32  ;;  %vm2481_vm1 = vcmp.gt.f32.partialorder %v2465_v14, 0.0  ;;  %vm2480_vm3 = vcmp.gt.f32.partialorder %v2464_v37, 0.0  ;;  %v2496_v41 = vmul.f32 0.2, %v2464_v37 }
 0x5e0   :  { %v2569_v42 = vsel %vm454_vm2, %v5119_v7, -inf  ;;  %v2566_v24 = vsel %vm454_vm2, %v5126_v21, -inf  ;;  %v5133_v31 = vadd.f32 %v5077_v12, %v2509_v22  ;;  %v5136_v10 = vadd.f32 %v5089_v57, %v2508_v3 }
 0x5e1   :  { %v2513_v23 = vsel %vm2481_vm1, %v2465_v14, %v2497_v43  ;;  %v2512_v56 = vsel %vm2480_vm3, %v2464_v37, %v2496_v41  ;;  %vm3434_vm7 = vcmask 195584  }
 0x5e2   :  { %v2563_v28 = vsel %vm454_vm2, %v5133_v31, -inf  ;;  %v2560_v16 = vsel %vm454_vm2, %v5136_v10, -inf  ;;  %v5143_v17 = vadd.f32 %v5077_v12, %v2513_v23  ;;  %v5146_v18 = vadd.f32 %v5089_v57, %v2512_v56 }
 0x5e3   :  { %2570 = vmax.xlane.f32.xlu1 %v2569_v42  ;;  %2567 = vmax.xlane.f32.xlu0 %v2566_v24 }
 0x5e4   :  { %v2575_v55 = vsel %vm454_vm2, %v5143_v17, -inf  ;;  %v2572_v39 = vsel %vm454_vm2, %v5146_v18, -inf }
 0x5e7   :  { %2564 = vmax.xlane.f32.xlu1 %v2563_v28  ;;  %2561 = vmax.xlane.f32.xlu0 %v2560_v16 }
 0x5eb   :  { %2576 = vmax.xlane.f32.xlu1 %v2575_v55  ;;  %2573 = vmax.xlane.f32.xlu0 %v2572_v39 }
 0x65b   :  { %v2535_v62 = vpop.xlane.xlu1 %2534  ;;  %v2532_v63 = vpop.xlane.xlu0 %2531 }
 0x65c   :  { %v2579_v60 = vsub.f32 %v5054_v50, %v2535_v62  ;;  %v2578_v12 = vsub.f32 %v5062_v15, %v2532_v63 }
 0x65e   :  { %v2596_v0 = vmul.f32 1.442695, %v2579_v60  ;;  %v2594_v61 = vmul.f32 1.442695, %v2578_v12 }
 0x65f   :  { %v2547_v57 = vpop.xlane.xlu1 %2546  ;;  %v2544_v48 = vpop.xlane.xlu0 %2543 }
 0x660   :  { %4342 = vpow2.f32 %v2596_v0  ;;  %v2583_v49 = vsub.f32 %v5065_v44, %v2547_v57  ;;  %v2582_v4 = vsub.f32 %v5068_v1, %v2544_v48 }
 0x661   :  { %4344 = vpow2.f32 %v2594_v61 }
 0x662   :  { %v2604_v11 = vmul.f32 1.442695, %v2583_v49  ;;  %v2602_v5 = vmul.f32 1.442695, %v2582_v4 }
 0x663   :  { %v2541_v27 = vpop.xlane.xlu1 %2540  ;;  %v2538_v8 = vpop.xlane.xlu0 %2537 }
 0x664   :  { %4346 = vpow2.f32 %v2604_v11  ;;  %v2581_v9 = vsub.f32 %v5080_v46, %v2541_v27  ;;  %v2580_v50 = vsub.f32 %v5092_v53, %v2538_v8 }
 0x665   :  { %4348 = vpow2.f32 %v2602_v5 }
 0x666   :  { %v2600_v15 = vmul.f32 1.442695, %v2581_v9  ;;  %v2598_v19 = vmul.f32 1.442695, %v2580_v50 }
 0x667   :  { %v2553_v20 = vpop.xlane.xlu1 %2552  ;;  %v2550_v47 = vpop.xlane.xlu0 %2549 }
 0x668   :  { %4350 = vpow2.f32 %v2600_v15  ;;  %v2585_v44 = vsub.f32 %v5095_v35, %v2553_v20  ;;  %v2584_v1 = vsub.f32 %v5098_v34, %v2550_v47 }
 0x669   :  { %4352 = vpow2.f32 %v2598_v19 }
 0x66a   :  { %v5160_v14 = vpop.eup %4342  ;;  %v2608_v37 = vmul.f32 1.442695, %v2585_v44  ;;  %v2606_v25 = vmul.f32 1.442695, %v2584_v1 }
 0x66b   :  { %v5162_v40 = vpop.eup %4344  ;;  %v2629_v46 = vsel %vm454_vm2, %v5160_v14, 0.0 }
 0x66c   :  { %4354 = vpow2.f32 %v2608_v37  ;;  %v2559_v53 = vpop.xlane.xlu1 %2558  ;;  %v2556_v26 = vpop.xlane.xlu0 %2555  ;;  %2630 = vadd.xlane.f32.xlu1 %v2629_v46  ;;  %v2626_v29 = vsel %vm454_vm2, %v5162_v40, 0.0 }
 0x66d   :  { %4356 = vpow2.f32 %v2606_v25  ;;  %v2587_v35 = vsub.f32 %v5113_v33, %v2559_v53  ;;  %v2586_v34 = vsub.f32 %v5116_v58, %v2556_v26  ;;  %2627 = vadd.xlane.f32.xlu0 %v2626_v29 }
 0x66e   :  { %v5170_v30 = vpop.eup %4346 }
 0x66f   :  { %v5172_v2 = vpop.eup %4348  ;;  %v2612_v13 = vmul.f32 1.442695, %v2587_v35  ;;  %v2610_v59 = vmul.f32 1.442695, %v2586_v34  ;;  %v2641_v6 = vsel %vm454_vm2, %v5170_v30, 0.0 }
 0x670   :  { %v2571_v36 = vpop.xlane.xlu1 %2570  ;;  %v2568_v51 = vpop.xlane.xlu0 %2567  ;;  %2642 = vadd.xlane.f32.xlu1 %v2641_v6  ;;  %v2638_v32 = vsel %vm454_vm2, %v5172_v2, 0.0 }
 0x671   :  { %4358 = vpow2.f32 %v2612_v13  ;;  %v2591_v33 = vsub.f32 %v5119_v7, %v2571_v36  ;;  %v2590_v58 = vsub.f32 %v5126_v21, %v2568_v51  ;;  %2639 = vadd.xlane.f32.xlu0 %v2638_v32 }
 0x672   :  { %v5180_v22 = vpop.eup %4350  ;;  %4360 = vpow2.f32 %v2610_v59 }
 0x673   :  { %v5182_v43 = vpop.eup %4352  ;;  %v2620_v3 = vmul.f32 1.442695, %v2591_v33  ;;  %v2618_v41 = vmul.f32 1.442695, %v2590_v58  ;;  %v2635_v42 = vsel %vm454_vm2, %v5180_v22, 0.0 }
 0x674   :  { %v2565_v24 = vpop.xlane.xlu1 %2564  ;;  %v2562_v23 = vpop.xlane.xlu0 %2561  ;;  %2636 = vadd.xlane.f32.xlu1 %v2635_v42  ;;  %v2632_v56 = vsel %vm454_vm2, %v5182_v43, 0.0 }
 0x675   :  { %4362 = vpow2.f32 %v2620_v3  ;;  %v2589_v7 = vsub.f32 %v5133_v31, %v2565_v24  ;;  %v2588_v21 = vsub.f32 %v5136_v10, %v2562_v23  ;;  %2633 = vadd.xlane.f32.xlu0 %v2632_v56 }
 0x676   :  { %v5190_v28 = vpop.eup %4354  ;;  %4364 = vpow2.f32 %v2618_v41 }
 0x677   :  { %v5192_v16 = vpop.eup %4356  ;;  %v2616_v55 = vmul.f32 1.442695, %v2589_v7  ;;  %v2614_v39 = vmul.f32 1.442695, %v2588_v21  ;;  %v2647_v62 = vsel %vm454_vm2, %v5190_v28, 0.0 }
 0x678   :  { %v2577_v63 = vpop.xlane.xlu1 %2576  ;;  %v2574_v60 = vpop.xlane.xlu0 %2573  ;;  %2648 = vadd.xlane.f32.xlu1 %v2647_v62  ;;  %v2644_v12 = vsel %vm454_vm2, %v5192_v16, 0.0 }
 0x679   :  { %4366 = vpow2.f32 %v2616_v55  ;;  %v2593_v31 = vsub.f32 %v5143_v17, %v2577_v63  ;;  %v2592_v10 = vsub.f32 %v5146_v18, %v2574_v60  ;;  %2645 = vadd.xlane.f32.xlu0 %v2644_v12 }
 0x67a   :  { %4368 = vpow2.f32 %v2614_v39 }
 0x67b   :  { %v5200_v0 = vpop.eup %4358  ;;  %v2624_v61 = vmul.f32 1.442695, %v2593_v31  ;;  %v2622_v57 = vmul.f32 1.442695, %v2592_v10 }
 0x67c   :  { %v5202_v48 = vpop.eup %4360  ;;  %v2653_v49 = vsel %vm454_vm2, %v5200_v0, 0.0 }
 0x67d   :  { %4370 = vpow2.f32 %v2624_v61  ;;  %2654 = vadd.xlane.f32.xlu1 %v2653_v49  ;;  %v2650_v4 = vsel %vm454_vm2, %v5202_v48, 0.0  ;;  %v3164_v49 = vld [vmem:[%s5368_s2 + $0x50] sm:$0xff] }
 0x67e   :  { %4372 = vpow2.f32 %v2622_v57  ;;  %2651 = vadd.xlane.f32.xlu0 %v2650_v4  ;;  %v3162_v57 = vld [vmem:[%s5368_s2 + $0x40] sm:$0xff] }
 0x67f   :  { %v5208_v17 = vpop.eup %4362 }
 0x680   :  { %v5210_v18 = vpop.eup %4364  ;;  %v2665_v11 = vsel %vm454_vm2, %v5208_v17, 0.0 }
 0x681   :  { %2666 = vadd.xlane.f32.xlu1 %v2665_v11  ;;  %v2662_v5 = vsel %vm454_vm2, %v5210_v18, 0.0 }
 0x682   :  { %2663 = vadd.xlane.f32.xlu0 %v2662_v5 }
 0x683   :  { %v5216_v27 = vpop.eup %4366 }
 0x684   :  { %v5218_v8 = vpop.eup %4368  ;;  %v2659_v9 = vsel %vm454_vm2, %v5216_v27, 0.0 }
 0x685   :  { %2660 = vadd.xlane.f32.xlu1 %v2659_v9  ;;  %v2656_v50 = vsel %vm454_vm2, %v5218_v8, 0.0 }
 0x686   :  { %2657 = vadd.xlane.f32.xlu0 %v2656_v50 }
 0x687   :  { %v5224_v15 = vpop.eup %4370 }
 0x688   :  { %v5226_v19 = vpop.eup %4372  ;;  %v2671_v20 = vsel %vm454_vm2, %v5224_v15, 0.0 }
 0x689   :  { %2672 = vadd.xlane.f32.xlu1 %v2671_v20  ;;  %v2668_v47 = vsel %vm454_vm2, %v5226_v19, 0.0 }
 0x68a   :  { %2669 = vadd.xlane.f32.xlu0 %v2668_v47 }
 0x6f9   :  { %v2631_v44 = vpop.xlane.xlu1 %2630 }
 0x6fa   :  { %4374 = vrcp.f32 %v2631_v44  ;;  %v2628_v1 = vpop.xlane.xlu0 %2627 }
 0x6fb   :  { %4376 = vrcp.f32 %v2628_v1 }
 0x6fd   :  { %v2643_v37 = vpop.xlane.xlu1 %2642 }
 0x6fe   :  { %4378 = vrcp.f32 %v2643_v37  ;;  %v2640_v25 = vpop.xlane.xlu0 %2639 }
 0x6ff   :  { %4380 = vrcp.f32 %v2640_v25 }
 0x701   :  { %v2637_v46 = vpop.xlane.xlu1 %2636 }
 0x702   :  { %4382 = vrcp.f32 %v2637_v46  ;;  %v2634_v53 = vpop.xlane.xlu0 %2633 }
 0x703   :  { %4384 = vrcp.f32 %v2634_v53 }
 0x704   :  { %v4375_v26 = vpop.eup %4374 }
 0x705   :  { %v4377_v29 = vpop.eup %4376  ;;  %v2677_v35 = vmul.f32 %v4375_v26, %v5160_v14  ;;  %v2649_v34 = vpop.xlane.xlu1 %2648 }
 0x706   :  { %4386 = vrcp.f32 %v2649_v34  ;;  %v2646_v13 = vpop.xlane.xlu0 %2645  ;;  %v2675_v59 = vmul.f32 %v4377_v29, %v5162_v40 }
 0x707   :  { %4388 = vrcp.f32 %v2646_v13 }
 0x708   :  { %v4379_v6 = vpop.eup %4378  ;;  %4005 = vmatprep.mubr.msk.f32.mxu0 %vm454_vm2, %v2675_v59 }
 0x709   :  { %v4381_v36 = vpop.eup %4380  ;;  %v2685_v51 = vmul.f32 %v4379_v6, %v5170_v30  ;;  %4006 = vmatmul.mubr.msk.f32.vlgmr.msra.gmra.mrb[32].mxu0 %vm454_vm2, %v2677_v35 }
 0x70a   :  { %4240 = vmatpush3.bf16.msra.mxu0 %v4989_v45  ;;  %v2655_v32 = vpop.xlane.xlu1 %2654  ;;  %v2683_v33 = vmul.f32 %v4381_v36, %v5172_v2 }
 0x70b   :  { %4390 = vrcp.f32 %v2655_v32  ;;  %4242 = vmatprep.subr.bf16.mxu0 %v5000_v54  ;;  %v2652_v14 = vpop.xlane.xlu0 %2651 }
 0x70c   :  { %v4383_v58 = vpop.eup %4382  ;;  %4392 = vrcp.f32 %v2652_v14  ;;  %4019 = vmatprep.mubr.msk.f32.mxu1 %vm454_vm2, %v2683_v33  ;;  %v3561_v14 = vld [vmem:[%s5368_s2 + $0x30] ss:$0 sm:$0xff] }
 0x70d   :  { %v4385_v40 = vpop.eup %4384  ;;  %4020 = vmatmul.mubr.msk.f32.vlgmr.msra.gmra.mrb[32].mxu1 %vm454_vm2, %v2685_v51  ;;  %v2681_v30 = vmul.f32 %v4383_v58, %v5180_v22 }
 0x70e   :  { %4244 = vmatpush3.bf16.msra.mxu0 %v5000_v54  ;;  %4248 = vmatpush3.bf16.msra.mxu1 %v4987_v38  ;;  %v2667_v45 = vpop.xlane.xlu1 %2666  ;;  %v2679_v2 = vmul.f32 %v4385_v40, %v5182_v43 }
 0x70f   :  { %4394 = vrcp.f32 %v2667_v45  ;;  %4250 = vmatprep.subr.bf16.mxu1 %v4998_v52  ;;  %v2664_v3 = vpop.xlane.xlu0 %2663 }
 0x710   :  { %v4387_v41 = vpop.eup %4386  ;;  %4396 = vrcp.f32 %v2664_v3  ;;  %4008 = vmatprep.mubr.msk.f32.mxu0 %vm454_vm2, %v2679_v2  ;;  %v3562_v2 = vld [vmem:[%s5368_s2 + $0x38] ss:$0 sm:$0xff] }
 0x711   :  { %v4389_v42 = vpop.eup %4388  ;;  %4009 = vmatmul.mubr.msk.f32.gmra.mrb[34].mxu0 %vm454_vm2, %v2681_v30  ;;  %v2689_v22 = vmul.f32 %v4387_v41, %v5190_v28 }
 0x712   :  { %4252 = vmatpush3.bf16.msra.mxu1 %v4998_v52  ;;  %v2661_v54 = vpop.xlane.xlu1 %2660  ;;  %v2687_v38 = vmul.f32 %v4389_v42, %v5192_v16 }
 0x713   :  { %4398 = vrcp.f32 %v2661_v54  ;;  %v2658_v43 = vpop.xlane.xlu0 %2657 }
 0x714   :  { %4400 = vrcp.f32 %v2658_v43  ;;  %4022 = vmatprep.mubr.msk.f32.mxu1 %vm454_vm2, %v2687_v38 }
 0x715   :  { %v4391_v24 = vpop.eup %4390  ;;  %4023 = vmatmul.mubr.msk.f32.gmra.mrb[34].mxu1 %vm454_vm2, %v2689_v22 }
 0x716   :  { %v4393_v23 = vpop.eup %4392  ;;  %v2693_v56 = vmul.f32 %v4391_v24, %v5200_v0  ;;  %v2673_v7 = vpop.xlane.xlu1 %2672 }
 0x717   :  { %4402 = vrcp.f32 %v2673_v7  ;;  %v2670_v21 = vpop.xlane.xlu0 %2669  ;;  %v2691_v28 = vmul.f32 %v4393_v23, %v5202_v48  ;;  %v3163_v48 = vld [vmem:[%s5368_s2 + $0x48] sm:$0xff] }
 0x718   :  { %4404 = vrcp.f32 %v2670_v21  ;;  %v4253_v4 = vpack.c.bf16 %v3163_v48, %v3162_v57 }
 0x719   :  { %v4395_v52 = vpop.eup %4394  ;;  %4033 = vmatprep.mubr.msk.f32.mxu0 %vm454_vm2, %v2691_v28 }
 0x71a   :  { %v4397_v16 = vpop.eup %4396  ;;  %v2701_v55 = vmul.f32 %v4395_v52, %v5208_v17  ;;  %4034 = vmatmul.mubr.msk.f32.vlgmr.msra.gmra.mrb[36].mxu0 %vm454_vm2, %v2693_v56  ;;  %v3165_v17 = vld [vmem:[%s5368_s2 + $0x58] sm:$0xff]  ;;  %4254 = vmatprep.subr.bf16.mxu0 %v4253_v4 }
 0x71b   :  { %v2699_v39 = vmul.f32 %v4397_v16, %v5210_v18  ;;  %v4257_v18 = vpack.c.bf16 %v3165_v17, %v3164_v49  ;;  %4256 = vmatpush3.bf16.msra.mxu0 %v4253_v4 }
 0x71d   :  { %v4399_v62 = vpop.eup %4398  ;;  %4047 = vmatprep.mubr.msk.f32.mxu1 %vm454_vm2, %v2699_v39  ;;  %4258 = vmatprep.subr.bf16.mxu0 %v4257_v18 }
 0x71e   :  { %v4401_v63 = vpop.eup %4400  ;;  %4048 = vmatmul.mubr.msk.f32.vlgmr.msra.gmra.mrb[36].mxu1 %vm454_vm2, %v2701_v55  ;;  %v2697_v60 = vmul.f32 %v4399_v62, %v5216_v27 }
 0x71f   :  { %v2695_v12 = vmul.f32 %v4401_v63, %v5218_v8  ;;  %4260 = vmatpush3.bf16.msra.mxu0 %v4257_v18 }
 0x721   :  { %v4403_v31 = vpop.eup %4402  ;;  %4036 = vmatprep.mubr.msk.f32.mxu0 %vm454_vm2, %v2695_v12 }
 0x722   :  { %v4405_v10 = vpop.eup %4404  ;;  %4037 = vmatmul.mubr.msk.f32.gmra.mrb[38].mxu0 %vm454_vm2, %v2697_v60  ;;  %v2705_v0 = vmul.f32 %v4403_v31, %v5224_v15 }
 0x723   :  { %v2703_v61 = vmul.f32 %v4405_v10, %v5226_v19 }
 0x725   :  { %4050 = vmatprep.mubr.msk.f32.mxu1 %vm454_vm2, %v2703_v61 }
 0x726   :  { %4051 = vmatmul.mubr.msk.f32.gmra.mrb[38].mxu1 %vm454_vm2, %v2705_v0 }
 0x7dc   :  { %v4007_v11 = vpop.f32.mrb[32].mxu0 }
 0x7dd   :  { %v2784_v5 = vpop.f32.mrb[33].mxu0  ;;  %v3101_v8 = vsel %vm454_vm2, %v4007_v11, 0.0 }
 0x7de   :  { %v3094_v15 = vsel %vm454_vm2, %v2784_v5, 0.0 }
 0x7e0   :  { %v4021_v27 = vpop.f32.mrb[32].mxu1 }
 0x7e1   :  { %v3102_v9 = vsel %vm454_vm2, %v4021_v27, 0.0  ;;  %v2881_v50 = vpop.f32.mrb[33].mxu1 }
 0x7e2   :  { %v3103_v19 = vadd.f32 %v3102_v9, %v3101_v8  ;;  %v3095_v20 = vsel %vm454_vm2, %v2881_v50, 0.0 }
 0x7e3   :  { %v3096_v47 = vadd.f32 %v3095_v20, %v3094_v15 }
 0x7e4   :  { %v4010_v44 = vpop.f32.mrb[34].mxu0 }
 0x7e5   :  { %v2794_v1 = vpop.f32.mrb[35].mxu0  ;;  %v3115_v25 = vsel %vm454_vm2, %v4010_v44, 0.0  ;;  %v3268_v44 = vld [vmem:[%s5368_s2 + $0x68] sm:$0xff] }
 0x7e6   :  { %v3108_v26 = vsel %vm454_vm2, %v2794_v1, 0.0  ;;  %v3269_v1 = vld [vmem:[%s5368_s2 + $0x70] sm:$0xff] }
 0x7e8   :  { %v4024_v37 = vpop.f32.mrb[34].mxu1 }
 0x7e9   :  { %v3116_v46 = vsel %vm454_vm2, %v4024_v37, 0.0  ;;  %v2891_v53 = vpop.f32.mrb[35].mxu1  ;;  %v4261_v37 = vpack.c.bf16 %v3269_v1, %v3268_v44 }
 0x7ea   :  { %v3117_v29 = vadd.f32 %v3116_v46, %v3115_v25  ;;  %v3109_v35 = vsel %vm454_vm2, %v2891_v53, 0.0  ;;  %v3567_v25 = vld [vmem:[%s5368_s2 + $0x60] ss:$0 sm:$0xff] }
 0x7eb   :  { %v3110_v34 = vadd.f32 %v3109_v35, %v3108_v26  ;;  %4262 = vmatprep.subr.bf16.mxu1 %v4261_v37 }
 0x7ec   :  { %4264 = vmatpush3.bf16.msra.mxu1 %v4261_v37 }
 0x7ed   :  { %v4035_v13 = vpop.f32.mrb[36].mxu0 }
 0x7ee   :  { %v3104_v59 = vsel %vm454_vm2, %v4035_v13, 0.0  ;;  %v2978_v6 = vpop.f32.mrb[37].mxu0 }
 0x7ef   :  { %v3105_v36 = vadd.f32 %v3104_v59, %v3103_v19  ;;  %v3097_v51 = vsel %vm454_vm2, %v2978_v6, 0.0  ;;  %v3572_v6 = vld [vmem:[%s5368_s2 + $0x78] ss:$0 sm:$0xff] }
 0x7f0   :  { %v3098_v32 = vadd.f32 %v3097_v51, %v3096_v47 }
 0x7f1   :  { %v4049_v33 = vpop.f32.mrb[36].mxu1 }
 0x7f2   :  { %v3106_v58 = vsel %vm454_vm2, %v4049_v33, 0.0  ;;  %v3075_v40 = vpop.f32.mrb[37].mxu1 }
 0x7f3   :  { %v3107_v30 = vadd.f32 %v3106_v58, %v3105_v36  ;;  %v3099_v45 = vsel %vm454_vm2, %v3075_v40, 0.0 }
 0x7f4   :  { %v3100_v3 = vadd.f32 %v3099_v45, %v3098_v32 }
 0x7f5   :  { %v3127_v41 = vmul.f32 %v3561_v14, %v3107_v30  ;;  %v4038_v42 = vpop.f32.mrb[38].mxu0 }
 0x7f6   :  { %v3126_v22 = vmul.f32 %v3561_v14, %v3100_v3  ;;  %v3118_v54 = vsel %vm454_vm2, %v4038_v42, 0.0  ;;  %v2988_v38 = vpop.f32.mrb[39].mxu0 }
 0x7f7   :  { %v3135_v43 = vadd.f32 %v3562_v2, %v3127_v41  ;;  %v3119_v24 = vadd.f32 %v3118_v54, %v3117_v29  ;;  %v3111_v23 = vsel %vm454_vm2, %v2988_v38, 0.0 }
 0x7f8   :  { %v3134_v56 = vadd.f32 %v3562_v2, %v3126_v22  ;;  %v3112_v7 = vadd.f32 %v3111_v23, %v3110_v34 }
 0x7f9   :  { %v3143_v21 = vmin.f32 %v3135_v43, 0.0  ;;  %v4052_v28 = vpop.f32.mrb[38].mxu1  ;;  %vm3139_vm13 = vcmp.gt.f32.partialorder %v3135_v43, 0.0 }
 0x7fa   :  { %v3142_v52 = vmin.f32 %v3134_v56, 0.0  ;;  %v3120_v16 = vsel %vm454_vm2, %v4052_v28, 0.0  ;;  %v3085_v55 = vpop.f32.mrb[39].mxu1  ;;  %vm3138_vm12 = vcmp.gt.f32.partialorder %v3134_v56, 0.0  ;;  %v3582_v28 = vld [vmem:[%s5368_s2 + $0x88] ss:$0 sm:$0xff] }
 0x7fb   :  { %v3148_v39 = vmul.f32 1.442695, %v3143_v21  ;;  %v3121_v62 = vadd.f32 %v3120_v16, %v3119_v24  ;;  %v3113_v63 = vsel %vm454_vm2, %v3085_v55, 0.0 }
 0x7fc   :  { %v3146_v60 = vmul.f32 1.442695, %v3142_v52  ;;  %v3114_v12 = vadd.f32 %v3113_v63, %v3112_v7 }
 0x7fd   :  { %4406 = vpow2.f32 %v3148_v39  ;;  %v3129_v31 = vmul.f32 %v3561_v14, %v3121_v62 }
 0x7fe   :  { %v3128_v10 = vmul.f32 %v3561_v14, %v3114_v12  ;;  %4408 = vpow2.f32 %v3146_v60 }
 0x7ff   :  { %v3137_v0 = vadd.f32 %v3562_v2, %v3129_v31 }
 0x800   :  { %v3136_v61 = vadd.f32 %v3562_v2, %v3128_v10 }
 0x801   :  { %v3145_v57 = vmin.f32 %v3137_v0, 0.0  ;;  %vm3141_vm15 = vcmp.gt.f32.partialorder %v3137_v0, 0.0 }
 0x802   :  { %v3144_v48 = vmin.f32 %v3136_v61, 0.0  ;;  %vm3140_vm14 = vcmp.gt.f32.partialorder %v3136_v61, 0.0 }
 0x803   :  { %v3152_v49 = vmul.f32 1.442695, %v3145_v57 }
 0x804   :  { %v3150_v4 = vmul.f32 1.442695, %v3144_v48 }
 0x805   :  { %4410 = vpow2.f32 %v3152_v49 }
 0x806   :  { %4412 = vpow2.f32 %v3150_v4 }
 0x807   :  { %v4407_v17 = vpop.eup %4406 }
 0x808   :  { %v4409_v18 = vpop.eup %4408  ;;  %v3564_v11 = vadd.f32 -1.0, %v4407_v17 }
 0x809   :  { %v3563_v5 = vadd.f32 -1.0, %v4409_v18 }
 0x80a   :  { %v3159_v8 = vsel %vm3139_vm13, %v3135_v43, %v3564_v11 }
 0x80b   :  { %v3158_v27 = vsel %vm3138_vm12, %v3134_v56, %v3563_v5  ;;  %v3581_v56 = vld [vmem:[%s5368_s2 + $0x80] ss:$0 sm:$0xff] }
 0x80c   :  { %4061 = vmatprep.mubr.msk.f32.mxu0 %vm454_vm2, %v3158_v27 }
 0x80d   :  { %4062 = vmatmul.mubr.msk.f32.vlgmr.msra.gmra.mrb[40].mxu0 %vm454_vm2, %v3159_v8 }
 0x80f   :  { %v4411_v9 = vpop.eup %4410 }
 0x810   :  { %v4413_v50 = vpop.eup %4412  ;;  %v3566_v15 = vadd.f32 -1.0, %v4411_v9 }
 0x811   :  { %v3565_v19 = vadd.f32 -1.0, %v4413_v50 }
 0x812   :  { %v3161_v47 = vsel %vm3141_vm15, %v3137_v0, %v3566_v15 }
 0x813   :  { %v3160_v20 = vsel %vm3140_vm14, %v3136_v61, %v3565_v19 }
 0x814   :  { %4064 = vmatprep.mubr.msk.f32.mxu0 %vm454_vm2, %v3160_v20 }
 0x815   :  { %4065 = vmatmul.mubr.msk.f32.gmra.mrb[42].mxu0 %vm454_vm2, %v3161_v47 }
 0x8e0   :  { %v4063_v46 = vpop.f32.mrb[40].mxu0 }
 0x8e1   :  { %v3249_v53 = vpop.f32.mrb[41].mxu0  ;;  %v5319_v29 = vadd.f32 %v4063_v46, %v3567_v25 }
 0x8e2   :  { %v5317_v26 = vadd.f32 %v3567_v25, %v3249_v53 }
 0x8e4   :  { %4071 = vmatprep.mubr.msk.f32.mxu1 %vm40_vm0, %v5317_v26 }
 0x8e5   :  { %4072 = vmatmul.mubr.msk.f32.vlgmr.msra.gmra.mrb[40].mxu1 %vm40_vm0, %v5319_v29 }
 0x8e8   :  { %v4066_v35 = vpop.f32.mrb[42].mxu0 }
 0x8e9   :  { %v3259_v34 = vpop.f32.mrb[43].mxu0  ;;  %v5327_v59 = vadd.f32 %v4066_v35, %v3567_v25 }
 0x8ea   :  { %v5325_v13 = vadd.f32 %v3567_v25, %v3259_v34 }
 0x8ec   :  { %4074 = vmatprep.mubr.msk.f32.mxu1 %vm40_vm0, %v5325_v13 }
 0x8ed   :  { %4075 = vmatmul.mubr.msk.f32.gmra.mrb[42].mxu1 %vm40_vm0, %v5327_v59 }
 0x9b8   :  { %v4073_v36 = vpop.f32.mrb[40].mxu1 }
 0x9b9   :  { %v3359_v51 = vadd.f32 %v4073_v36, %v3572_v6  ;;  %v3353_v32 = vpop.f32.mrb[41].mxu1 }
 0x9ba   :  { %v3354_v33 = vadd.f32 %v3572_v6, %v3353_v32 }
 0x9bb   :  { %v3379_v14 = vmin.f32 %v3359_v51, 0.0  ;;  %vm3375_vm2 = vcmp.gt.f32.partialorder %v3359_v51, 0.0 }
 0x9bc   :  { %v3378_v58 = vmin.f32 %v3354_v33, 0.0  ;;  %vm3374_vm4 = vcmp.gt.f32.partialorder %v3354_v33, 0.0 }
 0x9bd   :  { %v3384_v40 = vmul.f32 1.442695, %v3379_v14 }
 0x9be   :  { %v3382_v30 = vmul.f32 1.442695, %v3378_v58 }
 0x9bf   :  { %4414 = vpow2.f32 %v3384_v40 }
 0x9c0   :  { %4416 = vpow2.f32 %v3382_v30  ;;  %v4076_v45 = vpop.f32.mrb[42].mxu1 }
 0x9c1   :  { %v3369_v2 = vadd.f32 %v4076_v45, %v3572_v6  ;;  %v3363_v3 = vpop.f32.mrb[43].mxu1 }
 0x9c2   :  { %v3364_v41 = vadd.f32 %v3572_v6, %v3363_v3 }
 0x9c3   :  { %v3381_v42 = vmin.f32 %v3369_v2, 0.0  ;;  %vm3377_vm5 = vcmp.gt.f32.partialorder %v3369_v2, 0.0 }
 0x9c4   :  { %v3380_v22 = vmin.f32 %v3364_v41, 0.0  ;;  %vm3376_vm6 = vcmp.gt.f32.partialorder %v3364_v41, 0.0 }
 0x9c5   :  { %v3388_v54 = vmul.f32 1.442695, %v3381_v42 }
 0x9c6   :  { %v3386_v38 = vmul.f32 1.442695, %v3380_v22 }
 0x9c7   :  { %4418 = vpow2.f32 %v3388_v54 }
 0x9c8   :  { %4420 = vpow2.f32 %v3386_v38 }
 0x9c9   :  { %v4415_v43 = vpop.eup %4414 }
 0x9ca   :  { %v4417_v24 = vpop.eup %4416  ;;  %v3578_v23 = vadd.f32 -1.0, %v4415_v43 }
 0x9cb   :  { %v3577_v7 = vadd.f32 -1.0, %v4417_v24 }
 0x9cc   :  { %v3395_v21 = vsel %vm3375_vm2, %v3359_v51, %v3578_v23 }
 0x9cd   :  { %v3394_v52 = vsel %vm3374_vm4, %v3354_v33, %v3577_v7  ;;  %v3403_v16 = vmul.f32 %v3581_v56, %v3395_v21 }
 0x9ce   :  { %v3402_v55 = vmul.f32 %v3581_v56, %v3394_v52 }
 0x9cf   :  { %v3411_v39 = vadd.f32 %v3582_v28, %v3403_v16 }
 0x9d0   :  { %v3410_v62 = vadd.f32 %v3582_v28, %v3402_v55 }
 0x9d1   :  { %v4419_v63 = vpop.eup %4418  ;;  %3420 = vrot.lane.b32.xlu1 %v3411_v39, %s4430_s0 }
 0x9d2   :  { %v4421_v60 = vpop.eup %4420  ;;  %v3580_v12 = vadd.f32 -1.0, %v4419_v63  ;;  %3418 = vrot.lane.b32.xlu0 %v3410_v62, %s4430_s0 }
 0x9d3   :  { %v3579_v31 = vadd.f32 -1.0, %v4421_v60 }
 0x9d4   :  { %v3397_v10 = vsel %vm3377_vm5, %v3369_v2, %v3580_v12 }
 0x9d5   :  { %v3396_v0 = vsel %vm3376_vm6, %v3364_v41, %v3579_v31  ;;  %v3405_v57 = vmul.f32 %v3581_v56, %v3397_v10 }
 0x9d6   :  { %v3404_v61 = vmul.f32 %v3581_v56, %v3396_v0 }
 0x9d7   :  { %v3413_v49 = vadd.f32 %v3582_v28, %v3405_v57 }
 0x9d8   :  { %v3412_v48 = vadd.f32 %v3582_v28, %v3404_v61 }
 0x9da   :  { %3422 = vrot.lane.b32.xlu1 %v3412_v48, %s4430_s0 }
 0x9de   :  { %3424 = vrot.lane.b32.xlu1 %v3413_v49, %s4430_s0 }
 0xa43   :  { %v3421_v4 = vpop.permute.xlu1 %3420 }
 0xa44   :  { %v3431_v17 = vsel %vm40_vm0, %v5319_v29, %v3421_v4  ;;  %v3419_v18 = vpop.permute.xlu0 %3418 }
 0xa45   :  { %v3436_v11 = vsel %vm3434_vm7, %v3431_v17, 0.0  ;;  %v3430_v5 = vsel %vm40_vm0, %v5317_v26, %v3419_v18 }
 0xa46   :  { %3440 = vst [vmem:[%s5371_s5 + $0x8] sm:$0xff] %v3436_v11  ;;  %v3435_v27 = vsel %vm3434_vm7, %v3430_v5, 0.0 }
 0xa47   :  { %3439 = vst [vmem:[%s5371_s5] sm:$0xff] %v3435_v27 }
 0xa4c   :  { %v3423_v8 = vpop.permute.xlu1 %3422 }
 0xa4d   :  { %v3432_v9 = vsel %vm40_vm0, %v5325_v13, %v3423_v8 }
 0xa4e   :  { %v3437_v50 = vsel %vm3434_vm7, %v3432_v9, 0.0 }
 0xa4f   :  { %3441 = vst [vmem:[%s5371_s5 + $0x10] sm:$0xff] %v3437_v50 }
 0xa50   :  { %v3425_v15 = vpop.permute.xlu1 %3424 }
 0xa51   :  { %v3433_v19 = vsel %vm40_vm0, %v5327_v59, %v3425_v15 }
 0xa52   :  { %v3438_v20 = vsel %vm3434_vm7, %v3433_v19, 0.0 }
 0xa53   :  { %3442 = vst [vmem:[%s5371_s5 + $0x18] sm:$0xff] %v3438_v20 }

</bundles_post_ra>
